<compile_context>
chip_gen: v6e
topology: v6e:2x2x1
jax: 0.10.0
libtpu: 0.0.40
codegen_flags: <defaults>
</compile_context>

<pallas_src>
import functools

import jax
import jax.numpy as jnp
from jax import lax
from jax.experimental import pallas as pl
from jax.experimental.pallas import tpu as pltpu

KSIZES = (1, 3, 5)            # candidate primitives (conv kernel sizes)
KMAX = max(KSIZES)            # all primitives folded into one KMAX x KMAX conv
PAD = KMAX // 2               # 2-pixel halo
N_TAPS = KMAX * KMAX          # 25 taps of the folded kernel


def _round_up(x, m):
    return (x + m - 1) // m * m


# ----------------------------- fused Pallas kernel ---------------------------
def _make_cell_kernel(W, cin_p, cout, cout_p, lin, lout, mm_dtype):
    """relu -> conv1(folded 5x5) -> relu -> conv2(folded 5x5) + fused 1x1 shortcut."""
    Wp = W + 2 * PAD
    K1 = N_TAPS * cin_p                 # layer-1 im2col contraction depth
    K2 = N_TAPS * cout_p + cin_p        # layer-2 taps + fused shortcut rows
    HALO = PAD * Wp + PAD               # flat offset of pixel (0, 0) in the padded plane

    def kernel(x_ref, w1_ref, w2_ref, bias_ref, mask_ref, o_ref, patch_ref, hpad_ref):
        x_raw = x_ref[0]                               # (cin_p, lin)  padded-flat, f32
        x_act = jnp.maximum(x_raw, 0.0)                # ReLU for the residual branch
        mask = mask_ref[...]                           # (1, lout) -> 1.0 where col < W

        # ---- layer 1: transposed im2col, then one lane-dense MXU matmul -------
        for kh in range(KMAX):
            for kw in range(KMAX):
                t = kh * KMAX + kw
                off = kh * Wp + kw
                patch_ref[t * cin_p:(t + 1) * cin_p, :] = x_act[:, off:off + lout]
        out1 = jnp.dot(w1_ref[...], patch_ref[0:K1, :].astype(mm_dtype),
                       preferred_element_type=jnp.float32)           # (cout, lout)
        # bias + ReLU; zero the inter-row garbage columns so they become halo zeros
        h = jnp.maximum(out1 + bias_ref[:, 0:1], 0.0) * mask

        # ---- re-pad h entirely inside VMEM (h never goes back to HBM) ---------
        hpad_ref[:, 0:HALO] = jnp.zeros((cout_p, HALO), jnp.float32)
        hpad_ref[:, HALO + lout:lin] = jnp.zeros((cout_p, lin - HALO - lout), jnp.float32)
        if cout_p > cout:
            hpad_ref[cout:cout_p, :] = jnp.zeros((cout_p - cout, lin), jnp.float32)
        hpad_ref[0:cout, HALO:HALO + lout] = h
        h_all = hpad_ref[...]                           # (cout_p, lin)

        # ---- layer 2 im2col + fused 1x1 shortcut rows (raw, un-ReLU'd x) ------
        for kh in range(KMAX):
            for kw in range(KMAX):
                t = kh * KMAX + kw
                off = kh * Wp + kw
                patch_ref[t * cout_p:(t + 1) * cout_p, :] = h_all[:, off:off + lout]
        patch_ref[N_TAPS * cout_p:K2, :] = x_raw[:, HALO:HALO + lout]

        out2 = jnp.dot(w2_ref[...], patch_ref[0:K2, :].astype(mm_dtype),
                       preferred_element_type=jnp.float32)            # (cout, lout)
        o_ref[0] = (out2 + bias_ref[:, 1:2]).astype(o_ref.dtype)

    return kernel


# --------------------------- wrapper-side weight prep ------------------------
def _fold_alpha(alpha_row, conv_params):
    """alpha-weighted sum of primitive kernels, zero-padded to KMAX x KMAX.
    Exact because every primitive is a linear stride-1 'same' convolution."""
    cin, cout = conv_params[0][0].shape[2], conv_params[0][0].shape[3]
    w_eff = jnp.zeros((KMAX, KMAX, cin, cout), jnp.float32)
    b_eff = jnp.zeros((cout,), jnp.float32)
    for i, (w, b) in enumerate(conv_params):
        k = w.shape[0]
        p = (KMAX - k) // 2
        w_eff = w_eff + alpha_row[i] * jnp.pad(w, ((p, p), (p, p), (0, 0), (0, 0)))
        b_eff = b_eff + alpha_row[i] * b
    return w_eff, b_eff


def _prep_weights(alpha, params, cin, cout, matmul_dtype):
    cin_p, cout_p = _round_up(cin, 8), _round_up(cout, 8)

    w1_eff, b1 = _fold_alpha(alpha[0], params['c1'])               # (5,5,cin,cout)
    w1_eff = jnp.pad(w1_eff, ((0, 0), (0, 0), (0, cin_p - cin), (0, 0)))
    w1_mat = w1_eff.reshape(N_TAPS * cin_p, cout).T                # (cout, K1)

    w2_eff, b2 = _fold_alpha(alpha[1], params['c2'])               # (5,5,cout,cout)
    w2_eff = jnp.pad(w2_eff, ((0, 0), (0, 0), (0, cout_p - cout), (0, 0)))
    w2_base = w2_eff.reshape(N_TAPS * cout_p, cout)
    w_sc, b_sc = params['sc']
    w_sc = jnp.pad(w_sc.reshape(cin, cout), ((0, cin_p - cin), (0, 0)))
    w2_mat = jnp.concatenate([w2_base, w_sc], axis=0).T            # (cout, K2): shortcut fused

    bias = jnp.stack([b1, b2 + b_sc], axis=1)                      # (cout, 2)
    return (w1_mat.astype(matmul_dtype), w2_mat.astype(matmul_dtype),
            bias.astype(jnp.float32))


# ------------------------------ glue / module --------------------------------
def calculate_gumbel_softmax(weights, t, key):
    noise = jax.random.uniform(key, weights.shape)
    y = (weights - jnp.log(-jnp.log(noise + 1e-20))) / t
    return jax.nn.softmax(y, axis=-1)


@functools.partial(jax.jit, static_argnames=("use_gumbel", "matmul_dtype"))
def cell_dis_auto_forward(x_nchw, arch_weights, params, *, use_gumbel=False,
                          t=1.0, key=None, matmul_dtype=jnp.bfloat16):
    x = x_nchw.astype(jnp.float32)
    N, cin, H, W = x.shape
    cout = params['c1'][0][0].shape[-1]
    cin_p, cout_p = _round_up(cin, 8), _round_up(cout, 8)
    Hp, Wp = H + 2 * PAD, W + 2 * PAD
    lout = H * Wp                      # padded-row-stride output slab length (lane-dense)
    lin = (Hp + 1) * Wp                # +1 zero row so the last tap's slice stays in range
    K1 = N_TAPS * cin_p
    K2 = N_TAPS * cout_p + cin_p

    if use_gumbel:
        alpha = jnp.stack([calculate_gumbel_softmax(arch_weights[i], t,
                                                    jax.random.fold_in(key, i))
                           for i in range(2)])
    else:
        alpha = jax.nn.softmax(arch_weights, axis=-1)

    w1_mat, w2_mat, bias = _prep_weights(alpha, params, cin, cout, matmul_dtype)

    # Single zero-pad of the *network input* (channels -> multiple of 8, 2-pixel
    # spatial halo), flattened so the kernel sees lane-dense (C, (Hp+1)*Wp) rows.
    # The inter-layer activation is re-padded in-kernel and never revisits HBM.
    x_p = jnp.pad(x, ((0, 0), (0, cin_p - cin), (PAD, PAD + 1), (PAD, PAD)))
    x_pf = x_p.reshape(N, cin_p, lin)

    # 1.0 where a flat column of the padded plane is a real pixel (w < W)
    mask = jnp.tile((jnp.arange(Wp) < W).astype(jnp.float32), H).reshape(1, lout)

    kernel = _make_cell_kernel(W, cin_p, cout, cout_p, lin, lout, matmul_dtype)
    out = pl.pallas_call(
        kernel,
        out_shape=jax.ShapeDtypeStruct((N, cout, lout), jnp.float32),
        grid=(N,),
        in_specs=[
            pl.BlockSpec((1, cin_p, lin), lambda n: (n, 0, 0)),   # padded-flat image
            pl.BlockSpec((cout, K1), lambda n: (0, 0)),           # folded layer-1 weights
            pl.BlockSpec((cout, K2), lambda n: (0, 0)),           # folded layer-2 + shortcut
            pl.BlockSpec((cout, 2), lambda n: (0, 0)),            # folded biases
            pl.BlockSpec((1, lout), lambda n: (0, 0)),            # valid-column mask
        ],
        out_specs=pl.BlockSpec((1, cout, lout), lambda n: (n, 0, 0)),
        scratch_shapes=[
            pltpu.VMEM((max(K1, K2), lout), jnp.float32),         # transposed im2col patch
            pltpu.VMEM((cout_p, lin), jnp.float32),               # halo-padded h
        ],
        compiler_params=pltpu.CompilerParams(dimension_semantics=("parallel",)),
        # TODO(synk): for production H/W add an H-row tile grid axis (with a PAD-row
        # halo) so the per-step footprint respects v7x's smaller VMEM and both v7x
        # TensorCores stay busy when N is small.
    )(x_pf, w1_mat, w2_mat, bias, mask)

    # drop the (Wp - W) garbage columns of the lane-dense slab -> NCHW directly
    return out.reshape(N, cout, H, Wp)[:, :, :, :W]


def init_params(key, c_in, c_out):
    keys = iter(jax.random.split(key, 4 * len(KSIZES) + 2))

    def conv_wb(k_w, k_b, ksize, cin, cout):
        fan_in = ksize * ksize * cin
        w = jax.random.normal(k_w, (ksize, ksize, cin, cout), jnp.float32) / jnp.sqrt(fan_in)
        b = 0.01 * jax.random.normal(k_b, (cout,), jnp.float32)
        return w, b

    c1 = [conv_wb(next(keys), next(keys), k, c_in, c_out) for k in KSIZES]
    c2 = [conv_wb(next(keys), next(keys), k, c_out, c_out) for k in KSIZES]
    sc = conv_wb(next(keys), next(keys), 1, c_in, c_out)
    return {'c1': c1, 'c2': c2, 'sc': sc}


# ------------------------------ pure-JAX reference ---------------------------
def _ref_forward(x_nchw, arch_weights, params):
    x = jnp.transpose(x_nchw, (0, 2, 3, 1)).astype(jnp.float32)
    a = jax.nn.softmax(arch_weights, axis=-1)

    def conv(h, w, b):
        y = lax.conv_general_dilated(h, w, (1, 1), 'SAME',
                                     dimension_numbers=('NHWC', 'HWIO', 'NHWC'),
                                     precision=lax.Precision.HIGHEST)
        return y + b.reshape(1, 1, 1, -1)

    h = jax.nn.relu(x)
    h = sum(a[0, i] * conv(h, w, b) for i, (w, b) in enumerate(params['c1']))
    h = jax.nn.relu(h)
    h = sum(a[1, i] * conv(h, w, b) for i, (w, b) in enumerate(params['c2']))
    w_sc, b_sc = params['sc']
    out = h + conv(x, w_sc, b_sc)
    return jnp.transpose(out, (0, 3, 1, 2))


if __name__ == "__main__":
    key = jax.random.PRNGKey(0)
    k_x, k_a, k_p = jax.random.split(key, 3)

    N, C_in, H, W = 2, 4, 16, 16
    C_out = 8

    x = jax.random.normal(k_x, (N, C_in, H, W), jnp.float32)
    arch_weights = jax.random.normal(k_a, (2, len(KSIZES)), jnp.float32)
    params = init_params(k_p, C_in, C_out)

    ref = jax.block_until_ready(_ref_forward(x, arch_weights, params))

    # f32-operand path: proves the structural rewrite (alpha folding, im2col,
    # layer fusion, fused shortcut) is numerically exact.
    out_f32 = jax.block_until_ready(
        cell_dis_auto_forward(x, arch_weights, params, matmul_dtype=jnp.float32))
    assert out_f32.shape == (N, C_out, H, W), out_f32.shape
    assert jnp.allclose(out_f32, ref, atol=2e-3, rtol=2e-3), \
        float(jnp.max(jnp.abs(out_f32 - ref)))

    # default bf16-operand path (native MXU dtype on v6e/v7x), f32 accumulation.
    out_bf16 = jax.block_until_ready(cell_dis_auto_forward(x, arch_weights, params))
    assert out_bf16.shape == (N, C_out, H, W), out_bf16.shape
    assert jnp.allclose(out_bf16, ref, atol=5e-2, rtol=5e-2), \
        float(jnp.max(jnp.abs(out_bf16 - ref)))

    print("KERNEL_OK")
</pallas_src>

<mosaic_0001>
module attributes {stable_mosaic.version = 11 : i64} {
  func.func @kernel(%arg0: i32, %arg1: memref<1x8x420xf32, #tpu.memory_space<vmem>>, %arg2: memref<8x200xf32, #tpu.memory_space<vmem>>, %arg3: memref<8x208xf32, #tpu.memory_space<vmem>>, %arg4: memref<8x2xf32, #tpu.memory_space<vmem>>, %arg5: memref<1x320xf32, #tpu.memory_space<vmem>>, %arg6: memref<1x8x320xf32, #tpu.memory_space<vmem>>, %arg7: memref<208x320xf32, #tpu.memory_space<vmem>>, %arg8: memref<8x420xf32, #tpu.memory_space<vmem>>) attributes {dimension_semantics = [#tpu.dimension_semantics<parallel>], iteration_bounds = array<i64: 2>, scalar_prefetch = 0 : i64, scratch_operands = 2 : i64, tpu.core_type = #tpu.core_type<tc>, window_params = [{transform_indices = @transform_0, window_bounds = array<i64: 1, 8, 420>}, {pipeline_mode = #tpu.pipeline_mode<synchronous>, transform_indices = @transform_1, window_bounds = array<i64: 8, 200>}, {pipeline_mode = #tpu.pipeline_mode<synchronous>, transform_indices = @transform_2, window_bounds = array<i64: 8, 208>}, {pipeline_mode = #tpu.pipeline_mode<synchronous>, transform_indices = @transform_3, window_bounds = array<i64: 8, 2>}, {pipeline_mode = #tpu.pipeline_mode<synchronous>, transform_indices = @transform_4, window_bounds = array<i64: 1, 320>}, {transform_indices = @transform_5, window_bounds = array<i64: 1, 8, 320>}]} {
    %c0 = arith.constant 0 : index
    %c0_0 = arith.constant 0 : index
    %c0_1 = arith.constant 0 : index
    %0 = vector.load %arg1[%c0, %c0_0, %c0_1] : memref<1x8x420xf32, #tpu.memory_space<vmem>>, vector<1x8x420xf32>
    %1 = vector.shape_cast %0 : vector<1x8x420xf32> to vector<8x420xf32>
    %cst = arith.constant 0.000000e+00 : f32
    %2 = vector.broadcast %cst : f32 to vector<8x420xf32>
    %3 = arith.maximumf %1, %2 : vector<8x420xf32>
    %c0_2 = arith.constant 0 : index
    %c0_3 = arith.constant 0 : index
    %4 = vector.load %arg5[%c0_2, %c0_3] : memref<1x320xf32, #tpu.memory_space<vmem>>, vector<1x320xf32>
    %5 = vector.extract_strided_slice %3 {offsets = [0, 0], sizes = [8, 320], strides = [1, 1]} : vector<8x420xf32> to vector<8x320xf32>
    %c0_4 = arith.constant 0 : index
    %c0_5 = arith.constant 0 : index
    %6 = vector.load %arg7[%c0_4, %c0_5] : memref<208x320xf32, #tpu.memory_space<vmem>>, vector<8x320xf32>
    tpu.vector_store %arg7[%c0_4, %c0_5], %5 {strides = array<i32>} : memref<208x320xf32, #tpu.memory_space<vmem>>, vector<8x320xf32>,
    %7 = vector.extract_strided_slice %3 {offsets = [0, 1], sizes = [8, 320], strides = [1, 1]} : vector<8x420xf32> to vector<8x320xf32>
    %c8 = arith.constant 8 : index
    %c0_6 = arith.constant 0 : index
    %8 = vector.load %arg7[%c8, %c0_6] : memref<208x320xf32, #tpu.memory_space<vmem>>, vector<8x320xf32>
    tpu.vector_store %arg7[%c8, %c0_6], %7 {strides = array<i32>} : memref<208x320xf32, #tpu.memory_space<vmem>>, vector<8x320xf32>,
    %9 = vector.extract_strided_slice %3 {offsets = [0, 2], sizes = [8, 320], strides = [1, 1]} : vector<8x420xf32> to vector<8x320xf32>
    %c16 = arith.constant 16 : index
    %c0_7 = arith.constant 0 : index
    %10 = vector.load %arg7[%c16, %c0_7] : memref<208x320xf32, #tpu.memory_space<vmem>>, vector<8x320xf32>
    tpu.vector_store %arg7[%c16, %c0_7], %9 {strides = array<i32>} : memref<208x320xf32, #tpu.memory_space<vmem>>, vector<8x320xf32>,
    %11 = vector.extract_strided_slice %3 {offsets = [0, 3], sizes = [8, 320], strides = [1, 1]} : vector<8x420xf32> to vector<8x320xf32>
    %c24 = arith.constant 24 : index
    %c0_8 = arith.constant 0 : index
    %12 = vector.load %arg7[%c24, %c0_8] : memref<208x320xf32, #tpu.memory_space<vmem>>, vector<8x320xf32>
    tpu.vector_store %arg7[%c24, %c0_8], %11 {strides = array<i32>} : memref<208x320xf32, #tpu.memory_space<vmem>>, vector<8x320xf32>,
    %13 = vector.extract_strided_slice %3 {offsets = [0, 4], sizes = [8, 320], strides = [1, 1]} : vector<8x420xf32> to vector<8x320xf32>
    %c32 = arith.constant 32 : index
    %c0_9 = arith.constant 0 : index
    %14 = vector.load %arg7[%c32, %c0_9] : memref<208x320xf32, #tpu.memory_space<vmem>>, vector<8x320xf32>
    tpu.vector_store %arg7[%c32, %c0_9], %13 {strides = array<i32>} : memref<208x320xf32, #tpu.memory_space<vmem>>, vector<8x320xf32>,
    %15 = vector.extract_strided_slice %3 {offsets = [0, 20], sizes = [8, 320], strides = [1, 1]} : vector<8x420xf32> to vector<8x320xf32>
    %c40 = arith.constant 40 : index
    %c0_10 = arith.constant 0 : index
    %16 = vector.load %arg7[%c40, %c0_10] : memref<208x320xf32, #tpu.memory_space<vmem>>, vector<8x320xf32>
    tpu.vector_store %arg7[%c40, %c0_10], %15 {strides = array<i32>} : memref<208x320xf32, #tpu.memory_space<vmem>>, vector<8x320xf32>,
    %17 = vector.extract_strided_slice %3 {offsets = [0, 21], sizes = [8, 320], strides = [1, 1]} : vector<8x420xf32> to vector<8x320xf32>
    %c48 = arith.constant 48 : index
    %c0_11 = arith.constant 0 : index
    %18 = vector.load %arg7[%c48, %c0_11] : memref<208x320xf32, #tpu.memory_space<vmem>>, vector<8x320xf32>
    tpu.vector_store %arg7[%c48, %c0_11], %17 {strides = array<i32>} : memref<208x320xf32, #tpu.memory_space<vmem>>, vector<8x320xf32>,
    %19 = vector.extract_strided_slice %3 {offsets = [0, 22], sizes = [8, 320], strides = [1, 1]} : vector<8x420xf32> to vector<8x320xf32>
    %c56 = arith.constant 56 : index
    %c0_12 = arith.constant 0 : index
    %20 = vector.load %arg7[%c56, %c0_12] : memref<208x320xf32, #tpu.memory_space<vmem>>, vector<8x320xf32>
    tpu.vector_store %arg7[%c56, %c0_12], %19 {strides = array<i32>} : memref<208x320xf32, #tpu.memory_space<vmem>>, vector<8x320xf32>,
    %21 = vector.extract_strided_slice %3 {offsets = [0, 23], sizes = [8, 320], strides = [1, 1]} : vector<8x420xf32> to vector<8x320xf32>
    %c64 = arith.constant 64 : index
    %c0_13 = arith.constant 0 : index
    %22 = vector.load %arg7[%c64, %c0_13] : memref<208x320xf32, #tpu.memory_space<vmem>>, vector<8x320xf32>
    tpu.vector_store %arg7[%c64, %c0_13], %21 {strides = array<i32>} : memref<208x320xf32, #tpu.memory_space<vmem>>, vector<8x320xf32>,
    %23 = vector.extract_strided_slice %3 {offsets = [0, 24], sizes = [8, 320], strides = [1, 1]} : vector<8x420xf32> to vector<8x320xf32>
    %c72 = arith.constant 72 : index
    %c0_14 = arith.constant 0 : index
    %24 = vector.load %arg7[%c72, %c0_14] : memref<208x320xf32, #tpu.memory_space<vmem>>, vector<8x320xf32>
    tpu.vector_store %arg7[%c72, %c0_14], %23 {strides = array<i32>} : memref<208x320xf32, #tpu.memory_space<vmem>>, vector<8x320xf32>,
    %25 = vector.extract_strided_slice %3 {offsets = [0, 40], sizes = [8, 320], strides = [1, 1]} : vector<8x420xf32> to vector<8x320xf32>
    %c80 = arith.constant 80 : index
    %c0_15 = arith.constant 0 : index
    %26 = vector.load %arg7[%c80, %c0_15] : memref<208x320xf32, #tpu.memory_space<vmem>>, vector<8x320xf32>
    tpu.vector_store %arg7[%c80, %c0_15], %25 {strides = array<i32>} : memref<208x320xf32, #tpu.memory_space<vmem>>, vector<8x320xf32>,
    %27 = vector.extract_strided_slice %3 {offsets = [0, 41], sizes = [8, 320], strides = [1, 1]} : vector<8x420xf32> to vector<8x320xf32>
    %c88 = arith.constant 88 : index
    %c0_16 = arith.constant 0 : index
    %28 = vector.load %arg7[%c88, %c0_16] : memref<208x320xf32, #tpu.memory_space<vmem>>, vector<8x320xf32>
    tpu.vector_store %arg7[%c88, %c0_16], %27 {strides = array<i32>} : memref<208x320xf32, #tpu.memory_space<vmem>>, vector<8x320xf32>,
    %29 = vector.extract_strided_slice %3 {offsets = [0, 42], sizes = [8, 320], strides = [1, 1]} : vector<8x420xf32> to vector<8x320xf32>
    %c96 = arith.constant 96 : index
    %c0_17 = arith.constant 0 : index
    %30 = vector.load %arg7[%c96, %c0_17] : memref<208x320xf32, #tpu.memory_space<vmem>>, vector<8x320xf32>
    tpu.vector_store %arg7[%c96, %c0_17], %29 {strides = array<i32>} : memref<208x320xf32, #tpu.memory_space<vmem>>, vector<8x320xf32>,
    %31 = vector.extract_strided_slice %3 {offsets = [0, 43], sizes = [8, 320], strides = [1, 1]} : vector<8x420xf32> to vector<8x320xf32>
    %c104 = arith.constant 104 : index
    %c0_18 = arith.constant 0 : index
    %32 = vector.load %arg7[%c104, %c0_18] : memref<208x320xf32, #tpu.memory_space<vmem>>, vector<8x320xf32>
    tpu.vector_store %arg7[%c104, %c0_18], %31 {strides = array<i32>} : memref<208x320xf32, #tpu.memory_space<vmem>>, vector<8x320xf32>,
    %33 = vector.extract_strided_slice %3 {offsets = [0, 44], sizes = [8, 320], strides = [1, 1]} : vector<8x420xf32> to vector<8x320xf32>
    %c112 = arith.constant 112 : index
    %c0_19 = arith.constant 0 : index
    %34 = vector.load %arg7[%c112, %c0_19] : memref<208x320xf32, #tpu.memory_space<vmem>>, vector<8x320xf32>
    tpu.vector_store %arg7[%c112, %c0_19], %33 {strides = array<i32>} : memref<208x320xf32, #tpu.memory_space<vmem>>, vector<8x320xf32>,
    %35 = vector.extract_strided_slice %3 {offsets = [0, 60], sizes = [8, 320], strides = [1, 1]} : vector<8x420xf32> to vector<8x320xf32>
    %c120 = arith.constant 120 : index
    %c0_20 = arith.constant 0 : index
    %36 = vector.load %arg7[%c120, %c0_20] : memref<208x320xf32, #tpu.memory_space<vmem>>, vector<8x320xf32>
    tpu.vector_store %arg7[%c120, %c0_20], %35 {strides = array<i32>} : memref<208x320xf32, #tpu.memory_space<vmem>>, vector<8x320xf32>,
    %37 = vector.extract_strided_slice %3 {offsets = [0, 61], sizes = [8, 320], strides = [1, 1]} : vector<8x420xf32> to vector<8x320xf32>
    %c128 = arith.constant 128 : index
    %c0_21 = arith.constant 0 : index
    %38 = vector.load %arg7[%c128, %c0_21] : memref<208x320xf32, #tpu.memory_space<vmem>>, vector<8x320xf32>
    tpu.vector_store %arg7[%c128, %c0_21], %37 {strides = array<i32>} : memref<208x320xf32, #tpu.memory_space<vmem>>, vector<8x320xf32>,
    %39 = vector.extract_strided_slice %3 {offsets = [0, 62], sizes = [8, 320], strides = [1, 1]} : vector<8x420xf32> to vector<8x320xf32>
    %c136 = arith.constant 136 : index
    %c0_22 = arith.constant 0 : index
    %40 = vector.load %arg7[%c136, %c0_22] : memref<208x320xf32, #tpu.memory_space<vmem>>, vector<8x320xf32>
    tpu.vector_store %arg7[%c136, %c0_22], %39 {strides = array<i32>} : memref<208x320xf32, #tpu.memory_space<vmem>>, vector<8x320xf32>,
    %41 = vector.extract_strided_slice %3 {offsets = [0, 63], sizes = [8, 320], strides = [1, 1]} : vector<8x420xf32> to vector<8x320xf32>
    %c144 = arith.constant 144 : index
    %c0_23 = arith.constant 0 : index
    %42 = vector.load %arg7[%c144, %c0_23] : memref<208x320xf32, #tpu.memory_space<vmem>>, vector<8x320xf32>
    tpu.vector_store %arg7[%c144, %c0_23], %41 {strides = array<i32>} : memref<208x320xf32, #tpu.memory_space<vmem>>, vector<8x320xf32>,
    %43 = vector.extract_strided_slice %3 {offsets = [0, 64], sizes = [8, 320], strides = [1, 1]} : vector<8x420xf32> to vector<8x320xf32>
    %c152 = arith.constant 152 : index
    %c0_24 = arith.constant 0 : index
    %44 = vector.load %arg7[%c152, %c0_24] : memref<208x320xf32, #tpu.memory_space<vmem>>, vector<8x320xf32>
    tpu.vector_store %arg7[%c152, %c0_24], %43 {strides = array<i32>} : memref<208x320xf32, #tpu.memory_space<vmem>>, vector<8x320xf32>,
    %45 = vector.extract_strided_slice %3 {offsets = [0, 80], sizes = [8, 320], strides = [1, 1]} : vector<8x420xf32> to vector<8x320xf32>
    %c160 = arith.constant 160 : index
    %c0_25 = arith.constant 0 : index
    %46 = vector.load %arg7[%c160, %c0_25] : memref<208x320xf32, #tpu.memory_space<vmem>>, vector<8x320xf32>
    tpu.vector_store %arg7[%c160, %c0_25], %45 {strides = array<i32>} : memref<208x320xf32, #tpu.memory_space<vmem>>, vector<8x320xf32>,
    %47 = vector.extract_strided_slice %3 {offsets = [0, 81], sizes = [8, 320], strides = [1, 1]} : vector<8x420xf32> to vector<8x320xf32>
    %c168 = arith.constant 168 : index
    %c0_26 = arith.constant 0 : index
    %48 = vector.load %arg7[%c168, %c0_26] : memref<208x320xf32, #tpu.memory_space<vmem>>, vector<8x320xf32>
    tpu.vector_store %arg7[%c168, %c0_26], %47 {strides = array<i32>} : memref<208x320xf32, #tpu.memory_space<vmem>>, vector<8x320xf32>,
    %49 = vector.extract_strided_slice %3 {offsets = [0, 82], sizes = [8, 320], strides = [1, 1]} : vector<8x420xf32> to vector<8x320xf32>
    %c176 = arith.constant 176 : index
    %c0_27 = arith.constant 0 : index
    %50 = vector.load %arg7[%c176, %c0_27] : memref<208x320xf32, #tpu.memory_space<vmem>>, vector<8x320xf32>
    tpu.vector_store %arg7[%c176, %c0_27], %49 {strides = array<i32>} : memref<208x320xf32, #tpu.memory_space<vmem>>, vector<8x320xf32>,
    %51 = vector.extract_strided_slice %3 {offsets = [0, 83], sizes = [8, 320], strides = [1, 1]} : vector<8x420xf32> to vector<8x320xf32>
    %c184 = arith.constant 184 : index
    %c0_28 = arith.constant 0 : index
    %52 = vector.load %arg7[%c184, %c0_28] : memref<208x320xf32, #tpu.memory_space<vmem>>, vector<8x320xf32>
    tpu.vector_store %arg7[%c184, %c0_28], %51 {strides = array<i32>} : memref<208x320xf32, #tpu.memory_space<vmem>>, vector<8x320xf32>,
    %53 = vector.extract_strided_slice %3 {offsets = [0, 84], sizes = [8, 320], strides = [1, 1]} : vector<8x420xf32> to vector<8x320xf32>
    %c192 = arith.constant 192 : index
    %c0_29 = arith.constant 0 : index
    %54 = vector.load %arg7[%c192, %c0_29] : memref<208x320xf32, #tpu.memory_space<vmem>>, vector<8x320xf32>
    tpu.vector_store %arg7[%c192, %c0_29], %53 {strides = array<i32>} : memref<208x320xf32, #tpu.memory_space<vmem>>, vector<8x320xf32>,
    %c0_30 = arith.constant 0 : index
    %c0_31 = arith.constant 0 : index
    %55 = vector.load %arg2[%c0_30, %c0_31] : memref<8x200xf32, #tpu.memory_space<vmem>>, vector<8x200xf32>
    %c0_32 = arith.constant 0 : index
    %c0_33 = arith.constant 0 : index
    %56 = vector.load %arg7[%c0_32, %c0_33] : memref<208x320xf32, #tpu.memory_space<vmem>>, vector<200x320xf32>
    %cst_34 = arith.constant dense<0.000000e+00> : vector<8x320xf32>
    %57 = tpu.matmul %55, %56, %cst_34 {dimension_numbers = #tpu.dot_dimension_numbers<[1], [0], [0], [1], [0, 0, 1, 1], [], []>} : vector<8x200xf32>, vector<200x320xf32>, vector<8x320xf32> -> vector<8x320xf32>
    %c0_35 = arith.constant 0 : index
    %c0_36 = arith.constant 0 : index
    %58 = vector.load %arg4[%c0_35, %c0_36] : memref<8x2xf32, #tpu.memory_space<vmem>>, vector<8x1xf32>
    %59 = vector.broadcast %58 : vector<8x1xf32> to vector<8x320xf32>
    %60 = arith.addf %57, %59 : vector<8x320xf32>
    %cst_37 = arith.constant 0.000000e+00 : f32
    %61 = vector.broadcast %cst_37 : f32 to vector<8x320xf32>
    %62 = arith.maximumf %60, %61 : vector<8x320xf32>
    %63 = vector.broadcast %4 : vector<1x320xf32> to vector<8x320xf32>
    %64 = arith.mulf %62, %63 : vector<8x320xf32>
    %cst_38 = arith.constant 0.000000e+00 : f32
    %65 = vector.broadcast %cst_38 : f32 to vector<8x42xf32>
    %c0_39 = arith.constant 0 : index
    %c0_40 = arith.constant 0 : index
    %66 = vector.load %arg8[%c0_39, %c0_40] : memref<8x420xf32, #tpu.memory_space<vmem>>, vector<8x42xf32>
    tpu.vector_store %arg8[%c0_39, %c0_40], %65 {strides = array<i32>} : memref<8x420xf32, #tpu.memory_space<vmem>>, vector<8x42xf32>,
    %cst_41 = arith.constant 0.000000e+00 : f32
    %67 = vector.broadcast %cst_41 : f32 to vector<8x58xf32>
    %c0_42 = arith.constant 0 : index
    %c362 = arith.constant 362 : index
    %68 = vector.load %arg8[%c0_42, %c362] : memref<8x420xf32, #tpu.memory_space<vmem>>, vector<8x58xf32>
    tpu.vector_store %arg8[%c0_42, %c362], %67 {strides = array<i32>} : memref<8x420xf32, #tpu.memory_space<vmem>>, vector<8x58xf32>,
    %c0_43 = arith.constant 0 : index
    %c42 = arith.constant 42 : index
    %69 = vector.load %arg8[%c0_43, %c42] : memref<8x420xf32, #tpu.memory_space<vmem>>, vector<8x320xf32>
    tpu.vector_store %arg8[%c0_43, %c42], %64 {strides = array<i32>} : memref<8x420xf32, #tpu.memory_space<vmem>>, vector<8x320xf32>,
    %c0_44 = arith.constant 0 : index
    %c0_45 = arith.constant 0 : index
    %70 = vector.load %arg8[%c0_44, %c0_45] : memref<8x420xf32, #tpu.memory_space<vmem>>, vector<8x420xf32>
    %71 = vector.extract_strided_slice %70 {offsets = [0, 0], sizes = [8, 320], strides = [1, 1]} : vector<8x420xf32> to vector<8x320xf32>
    %c0_46 = arith.constant 0 : index
    %c0_47 = arith.constant 0 : index
    %72 = vector.load %arg7[%c0_46, %c0_47] : memref<208x320xf32, #tpu.memory_space<vmem>>, vector<8x320xf32>
    tpu.vector_store %arg7[%c0_46, %c0_47], %71 {strides = array<i32>} : memref<208x320xf32, #tpu.memory_space<vmem>>, vector<8x320xf32>,
    %73 = vector.extract_strided_slice %70 {offsets = [0, 1], sizes = [8, 320], strides = [1, 1]} : vector<8x420xf32> to vector<8x320xf32>
    %c8_48 = arith.constant 8 : index
    %c0_49 = arith.constant 0 : index
    %74 = vector.load %arg7[%c8_48, %c0_49] : memref<208x320xf32, #tpu.memory_space<vmem>>, vector<8x320xf32>
    tpu.vector_store %arg7[%c8_48, %c0_49], %73 {strides = array<i32>} : memref<208x320xf32, #tpu.memory_space<vmem>>, vector<8x320xf32>,
    %75 = vector.extract_strided_slice %70 {offsets = [0, 2], sizes = [8, 320], strides = [1, 1]} : vector<8x420xf32> to vector<8x320xf32>
    %c16_50 = arith.constant 16 : index
    %c0_51 = arith.constant 0 : index
    %76 = vector.load %arg7[%c16_50, %c0_51] : memref<208x320xf32, #tpu.memory_space<vmem>>, vector<8x320xf32>
    tpu.vector_store %arg7[%c16_50, %c0_51], %75 {strides = array<i32>} : memref<208x320xf32, #tpu.memory_space<vmem>>, vector<8x320xf32>,
    %77 = vector.extract_strided_slice %70 {offsets = [0, 3], sizes = [8, 320], strides = [1, 1]} : vector<8x420xf32> to vector<8x320xf32>
    %c24_52 = arith.constant 24 : index
    %c0_53 = arith.constant 0 : index
    %78 = vector.load %arg7[%c24_52, %c0_53] : memref<208x320xf32, #tpu.memory_space<vmem>>, vector<8x320xf32>
    tpu.vector_store %arg7[%c24_52, %c0_53], %77 {strides = array<i32>} : memref<208x320xf32, #tpu.memory_space<vmem>>, vector<8x320xf32>,
    %79 = vector.extract_strided_slice %70 {offsets = [0, 4], sizes = [8, 320], strides = [1, 1]} : vector<8x420xf32> to vector<8x320xf32>
    %c32_54 = arith.constant 32 : index
    %c0_55 = arith.constant 0 : index
    %80 = vector.load %arg7[%c32_54, %c0_55] : memref<208x320xf32, #tpu.memory_space<vmem>>, vector<8x320xf32>
    tpu.vector_store %arg7[%c32_54, %c0_55], %79 {strides = array<i32>} : memref<208x320xf32, #tpu.memory_space<vmem>>, vector<8x320xf32>,
    %81 = vector.extract_strided_slice %70 {offsets = [0, 20], sizes = [8, 320], strides = [1, 1]} : vector<8x420xf32> to vector<8x320xf32>
    %c40_56 = arith.constant 40 : index
    %c0_57 = arith.constant 0 : index
    %82 = vector.load %arg7[%c40_56, %c0_57] : memref<208x320xf32, #tpu.memory_space<vmem>>, vector<8x320xf32>
    tpu.vector_store %arg7[%c40_56, %c0_57], %81 {strides = array<i32>} : memref<208x320xf32, #tpu.memory_space<vmem>>, vector<8x320xf32>,
    %83 = vector.extract_strided_slice %70 {offsets = [0, 21], sizes = [8, 320], strides = [1, 1]} : vector<8x420xf32> to vector<8x320xf32>
    %c48_58 = arith.constant 48 : index
    %c0_59 = arith.constant 0 : index
    %84 = vector.load %arg7[%c48_58, %c0_59] : memref<208x320xf32, #tpu.memory_space<vmem>>, vector<8x320xf32>
    tpu.vector_store %arg7[%c48_58, %c0_59], %83 {strides = array<i32>} : memref<208x320xf32, #tpu.memory_space<vmem>>, vector<8x320xf32>,
    %85 = vector.extract_strided_slice %70 {offsets = [0, 22], sizes = [8, 320], strides = [1, 1]} : vector<8x420xf32> to vector<8x320xf32>
    %c56_60 = arith.constant 56 : index
    %c0_61 = arith.constant 0 : index
    %86 = vector.load %arg7[%c56_60, %c0_61] : memref<208x320xf32, #tpu.memory_space<vmem>>, vector<8x320xf32>
    tpu.vector_store %arg7[%c56_60, %c0_61], %85 {strides = array<i32>} : memref<208x320xf32, #tpu.memory_space<vmem>>, vector<8x320xf32>,
    %87 = vector.extract_strided_slice %70 {offsets = [0, 23], sizes = [8, 320], strides = [1, 1]} : vector<8x420xf32> to vector<8x320xf32>
    %c64_62 = arith.constant 64 : index
    %c0_63 = arith.constant 0 : index
    %88 = vector.load %arg7[%c64_62, %c0_63] : memref<208x320xf32, #tpu.memory_space<vmem>>, vector<8x320xf32>
    tpu.vector_store %arg7[%c64_62, %c0_63], %87 {strides = array<i32>} : memref<208x320xf32, #tpu.memory_space<vmem>>, vector<8x320xf32>,
    %89 = vector.extract_strided_slice %70 {offsets = [0, 24], sizes = [8, 320], strides = [1, 1]} : vector<8x420xf32> to vector<8x320xf32>
    %c72_64 = arith.constant 72 : index
    %c0_65 = arith.constant 0 : index
    %90 = vector.load %arg7[%c72_64, %c0_65] : memref<208x320xf32, #tpu.memory_space<vmem>>, vector<8x320xf32>
    tpu.vector_store %arg7[%c72_64, %c0_65], %89 {strides = array<i32>} : memref<208x320xf32, #tpu.memory_space<vmem>>, vector<8x320xf32>,
    %91 = vector.extract_strided_slice %70 {offsets = [0, 40], sizes = [8, 320], strides = [1, 1]} : vector<8x420xf32> to vector<8x320xf32>
    %c80_66 = arith.constant 80 : index
    %c0_67 = arith.constant 0 : index
    %92 = vector.load %arg7[%c80_66, %c0_67] : memref<208x320xf32, #tpu.memory_space<vmem>>, vector<8x320xf32>
    tpu.vector_store %arg7[%c80_66, %c0_67], %91 {strides = array<i32>} : memref<208x320xf32, #tpu.memory_space<vmem>>, vector<8x320xf32>,
    %93 = vector.extract_strided_slice %70 {offsets = [0, 41], sizes = [8, 320], strides = [1, 1]} : vector<8x420xf32> to vector<8x320xf32>
    %c88_68 = arith.constant 88 : index
    %c0_69 = arith.constant 0 : index
    %94 = vector.load %arg7[%c88_68, %c0_69] : memref<208x320xf32, #tpu.memory_space<vmem>>, vector<8x320xf32>
    tpu.vector_store %arg7[%c88_68, %c0_69], %93 {strides = array<i32>} : memref<208x320xf32, #tpu.memory_space<vmem>>, vector<8x320xf32>,
    %95 = vector.extract_strided_slice %70 {offsets = [0, 42], sizes = [8, 320], strides = [1, 1]} : vector<8x420xf32> to vector<8x320xf32>
    %c96_70 = arith.constant 96 : index
    %c0_71 = arith.constant 0 : index
    %96 = vector.load %arg7[%c96_70, %c0_71] : memref<208x320xf32, #tpu.memory_space<vmem>>, vector<8x320xf32>
    tpu.vector_store %arg7[%c96_70, %c0_71], %95 {strides = array<i32>} : memref<208x320xf32, #tpu.memory_space<vmem>>, vector<8x320xf32>,
    %97 = vector.extract_strided_slice %70 {offsets = [0, 43], sizes = [8, 320], strides = [1, 1]} : vector<8x420xf32> to vector<8x320xf32>
    %c104_72 = arith.constant 104 : index
    %c0_73 = arith.constant 0 : index
    %98 = vector.load %arg7[%c104_72, %c0_73] : memref<208x320xf32, #tpu.memory_space<vmem>>, vector<8x320xf32>
    tpu.vector_store %arg7[%c104_72, %c0_73], %97 {strides = array<i32>} : memref<208x320xf32, #tpu.memory_space<vmem>>, vector<8x320xf32>,
    %99 = vector.extract_strided_slice %70 {offsets = [0, 44], sizes = [8, 320], strides = [1, 1]} : vector<8x420xf32> to vector<8x320xf32>
    %c112_74 = arith.constant 112 : index
    %c0_75 = arith.constant 0 : index
    %100 = vector.load %arg7[%c112_74, %c0_75] : memref<208x320xf32, #tpu.memory_space<vmem>>, vector<8x320xf32>
    tpu.vector_store %arg7[%c112_74, %c0_75], %99 {strides = array<i32>} : memref<208x320xf32, #tpu.memory_space<vmem>>, vector<8x320xf32>,
    %101 = vector.extract_strided_slice %70 {offsets = [0, 60], sizes = [8, 320], strides = [1, 1]} : vector<8x420xf32> to vector<8x320xf32>
    %c120_76 = arith.constant 120 : index
    %c0_77 = arith.constant 0 : index
    %102 = vector.load %arg7[%c120_76, %c0_77] : memref<208x320xf32, #tpu.memory_space<vmem>>, vector<8x320xf32>
    tpu.vector_store %arg7[%c120_76, %c0_77], %101 {strides = array<i32>} : memref<208x320xf32, #tpu.memory_space<vmem>>, vector<8x320xf32>,
    %103 = vector.extract_strided_slice %70 {offsets = [0, 61], sizes = [8, 320], strides = [1, 1]} : vector<8x420xf32> to vector<8x320xf32>
    %c128_78 = arith.constant 128 : index
    %c0_79 = arith.constant 0 : index
    %104 = vector.load %arg7[%c128_78, %c0_79] : memref<208x320xf32, #tpu.memory_space<vmem>>, vector<8x320xf32>
    tpu.vector_store %arg7[%c128_78, %c0_79], %103 {strides = array<i32>} : memref<208x320xf32, #tpu.memory_space<vmem>>, vector<8x320xf32>,
    %105 = vector.extract_strided_slice %70 {offsets = [0, 62], sizes = [8, 320], strides = [1, 1]} : vector<8x420xf32> to vector<8x320xf32>
    %c136_80 = arith.constant 136 : index
    %c0_81 = arith.constant 0 : index
    %106 = vector.load %arg7[%c136_80, %c0_81] : memref<208x320xf32, #tpu.memory_space<vmem>>, vector<8x320xf32>
    tpu.vector_store %arg7[%c136_80, %c0_81], %105 {strides = array<i32>} : memref<208x320xf32, #tpu.memory_space<vmem>>, vector<8x320xf32>,
    %107 = vector.extract_strided_slice %70 {offsets = [0, 63], sizes = [8, 320], strides = [1, 1]} : vector<8x420xf32> to vector<8x320xf32>
    %c144_82 = arith.constant 144 : index
    %c0_83 = arith.constant 0 : index
    %108 = vector.load %arg7[%c144_82, %c0_83] : memref<208x320xf32, #tpu.memory_space<vmem>>, vector<8x320xf32>
    tpu.vector_store %arg7[%c144_82, %c0_83], %107 {strides = array<i32>} : memref<208x320xf32, #tpu.memory_space<vmem>>, vector<8x320xf32>,
    %109 = vector.extract_strided_slice %70 {offsets = [0, 64], sizes = [8, 320], strides = [1, 1]} : vector<8x420xf32> to vector<8x320xf32>
    %c152_84 = arith.constant 152 : index
    %c0_85 = arith.constant 0 : index
    %110 = vector.load %arg7[%c152_84, %c0_85] : memref<208x320xf32, #tpu.memory_space<vmem>>, vector<8x320xf32>
    tpu.vector_store %arg7[%c152_84, %c0_85], %109 {strides = array<i32>} : memref<208x320xf32, #tpu.memory_space<vmem>>, vector<8x320xf32>,
    %111 = vector.extract_strided_slice %70 {offsets = [0, 80], sizes = [8, 320], strides = [1, 1]} : vector<8x420xf32> to vector<8x320xf32>
    %c160_86 = arith.constant 160 : index
    %c0_87 = arith.constant 0 : index
    %112 = vector.load %arg7[%c160_86, %c0_87] : memref<208x320xf32, #tpu.memory_space<vmem>>, vector<8x320xf32>
    tpu.vector_store %arg7[%c160_86, %c0_87], %111 {strides = array<i32>} : memref<208x320xf32, #tpu.memory_space<vmem>>, vector<8x320xf32>,
    %113 = vector.extract_strided_slice %70 {offsets = [0, 81], sizes = [8, 320], strides = [1, 1]} : vector<8x420xf32> to vector<8x320xf32>
    %c168_88 = arith.constant 168 : index
    %c0_89 = arith.constant 0 : index
    %114 = vector.load %arg7[%c168_88, %c0_89] : memref<208x320xf32, #tpu.memory_space<vmem>>, vector<8x320xf32>
    tpu.vector_store %arg7[%c168_88, %c0_89], %113 {strides = array<i32>} : memref<208x320xf32, #tpu.memory_space<vmem>>, vector<8x320xf32>,
    %115 = vector.extract_strided_slice %70 {offsets = [0, 82], sizes = [8, 320], strides = [1, 1]} : vector<8x420xf32> to vector<8x320xf32>
    %c176_90 = arith.constant 176 : index
    %c0_91 = arith.constant 0 : index
    %116 = vector.load %arg7[%c176_90, %c0_91] : memref<208x320xf32, #tpu.memory_space<vmem>>, vector<8x320xf32>
    tpu.vector_store %arg7[%c176_90, %c0_91], %115 {strides = array<i32>} : memref<208x320xf32, #tpu.memory_space<vmem>>, vector<8x320xf32>,
    %117 = vector.extract_strided_slice %70 {offsets = [0, 83], sizes = [8, 320], strides = [1, 1]} : vector<8x420xf32> to vector<8x320xf32>
    %c184_92 = arith.constant 184 : index
    %c0_93 = arith.constant 0 : index
    %118 = vector.load %arg7[%c184_92, %c0_93] : memref<208x320xf32, #tpu.memory_space<vmem>>, vector<8x320xf32>
    tpu.vector_store %arg7[%c184_92, %c0_93], %117 {strides = array<i32>} : memref<208x320xf32, #tpu.memory_space<vmem>>, vector<8x320xf32>,
    %119 = vector.extract_strided_slice %70 {offsets = [0, 84], sizes = [8, 320], strides = [1, 1]} : vector<8x420xf32> to vector<8x320xf32>
    %c192_94 = arith.constant 192 : index
    %c0_95 = arith.constant 0 : index
    %120 = vector.load %arg7[%c192_94, %c0_95] : memref<208x320xf32, #tpu.memory_space<vmem>>, vector<8x320xf32>
    tpu.vector_store %arg7[%c192_94, %c0_95], %119 {strides = array<i32>} : memref<208x320xf32, #tpu.memory_space<vmem>>, vector<8x320xf32>,
    %121 = vector.extract_strided_slice %1 {offsets = [0, 42], sizes = [8, 320], strides = [1, 1]} : vector<8x420xf32> to vector<8x320xf32>
    %c200 = arith.constant 200 : index
    %c0_96 = arith.constant 0 : index
    %122 = vector.load %arg7[%c200, %c0_96] : memref<208x320xf32, #tpu.memory_space<vmem>>, vector<8x320xf32>
    tpu.vector_store %arg7[%c200, %c0_96], %121 {strides = array<i32>} : memref<208x320xf32, #tpu.memory_space<vmem>>, vector<8x320xf32>,
    %c0_97 = arith.constant 0 : index
    %c0_98 = arith.constant 0 : index
    %123 = vector.load %arg3[%c0_97, %c0_98] : memref<8x208xf32, #tpu.memory_space<vmem>>, vector<8x208xf32>
    %c0_99 = arith.constant 0 : index
    %c0_100 = arith.constant 0 : index
    %124 = vector.load %arg7[%c0_99, %c0_100] : memref<208x320xf32, #tpu.memory_space<vmem>>, vector<208x320xf32>
    %cst_101 = arith.constant dense<0.000000e+00> : vector<8x320xf32>
    %125 = tpu.matmul %123, %124, %cst_101 {dimension_numbers = #tpu.dot_dimension_numbers<[1], [0], [0], [1], [0, 0, 1, 1], [], []>} : vector<8x208xf32>, vector<208x320xf32>, vector<8x320xf32> -> vector<8x320xf32>
    %c0_102 = arith.constant 0 : index
    %c1 = arith.constant 1 : index
    %126 = vector.load %arg4[%c0_102, %c1] : memref<8x2xf32, #tpu.memory_space<vmem>>, vector<8x1xf32>
    %127 = vector.broadcast %126 : vector<8x1xf32> to vector<8x320xf32>
    %128 = arith.addf %125, %127 : vector<8x320xf32>
    %c0_103 = arith.constant 0 : index
    %c0_104 = arith.constant 0 : index
    %c0_105 = arith.constant 0 : index
    %129 = vector.load %arg6[%c0_103, %c0_104, %c0_105] : memref<1x8x320xf32, #tpu.memory_space<vmem>>, vector<1x8x320xf32>
    %130 = vector.shape_cast %129 : vector<1x8x320xf32> to vector<8x320xf32>
    %131 = vector.shape_cast %128 : vector<8x320xf32> to vector<1x8x320xf32>
    tpu.vector_store %arg6[%c0_103, %c0_104, %c0_105], %131 {strides = array<i32>} : memref<1x8x320xf32, #tpu.memory_space<vmem>>, vector<1x8x320xf32>,
    return
  }
  func.func @transform_0(%arg0: i32) -> (i32, i32, i32) {
    %c0_i32 = arith.constant 0 : i32
    %c0_i32_0 = arith.constant 0 : i32
    %c0_i32_1 = arith.constant 0 : i32
    return %arg0, %c0_i32, %c0_i32_0 : i32, i32, i32
  }
  func.func @transform_1(%arg0: i32) -> (i32, i32) {
    %c0_i32 = arith.constant 0 : i32
    %c0_i32_0 = arith.constant 0 : i32
    %c0_i32_1 = arith.constant 0 : i32
    return %c0_i32, %c0_i32_0 : i32, i32
  }
  func.func @transform_2(%arg0: i32) -> (i32, i32) {
    %c0_i32 = arith.constant 0 : i32
    %c0_i32_0 = arith.constant 0 : i32
    %c0_i32_1 = arith.constant 0 : i32
    return %c0_i32, %c0_i32_0 : i32, i32
  }
  func.func @transform_3(%arg0: i32) -> (i32, i32) {
    %c0_i32 = arith.constant 0 : i32
    %c0_i32_0 = arith.constant 0 : i32
    %c0_i32_1 = arith.constant 0 : i32
    return %c0_i32, %c0_i32_0 : i32, i32
  }
  func.func @transform_4(%arg0: i32) -> (i32, i32) {
    %c0_i32 = arith.constant 0 : i32
    %c0_i32_0 = arith.constant 0 : i32
    %c0_i32_1 = arith.constant 0 : i32
    return %c0_i32, %c0_i32_0 : i32, i32
  }
  func.func @transform_5(%arg0: i32) -> (i32, i32, i32) {
    %c0_i32 = arith.constant 0 : i32
    %c0_i32_0 = arith.constant 0 : i32
    %c0_i32_1 = arith.constant 0 : i32
    return %arg0, %c0_i32, %c0_i32_0 : i32, i32, i32
  }
}

</mosaic_0001>

<bundles_post_ra>
// kernel: tile.8
= control target key start
LH: loop header
LB: loop body
LE: loop exit
PB: predicated region body
PF: predicated region fallthrough
CT: control target
= control target key end

     0   :  { %s28_s0 = inlined_call_operand.vmem [shape: f32[20], index: 0, kind: input, shape index: {}]   ;;  %s29_s1 = inlined_call_operand.vmem [shape: f32[16,20], index: 1, kind: output, shape index: {}]  }
   0x1   :  { %v4_v0 = vld [vmem:[%s28_s0] ss:$0 sm:$0xff] }
   0x2   :  { %5 = vst [vmem:[%s29_s1] sm:$0xff] %v4_v0  ;;  %8 = vst [vmem:[%s29_s1 + $0x8] sm:$0xff] %v4_v0 }

// kernel: tile.9
= control target key start
LH: loop header
LB: loop body
LE: loop exit
PB: predicated region body
PF: predicated region fallthrough
CT: control target
= control target key end

     0   :  { %vm9_vm0 = vcmask 64512   ;;  %vm22_vm1 = vcmask 130048   ;;  %s174_s14 = smov 120   ;;  %s175_s15 = smov 100   ;;  %vm3_vm2 = vcmask 162816   ;;  %vm13_vm3 = vcmask 97280   ;;  %s262_s0 = inlined_call_operand.vmem [shape: f32[16,20], index: 0, kind: input, shape index: {}]   ;;  %s263_s1 = inlined_call_operand.vmem [shape: f32[1,320], index: 1, kind: output, shape index: {}]  }
   0x1   :  { %v140_v0 = vld [vmem:[%s262_s0 + $0x6] sm:$0x1]   ;;  %v144_v3 = vld [vmem:[%s262_s0 + $0x5] sm:$0x1]   ;;  %v142_v4 = vld [vmem:[%s262_s0 + $0xc] sm:$0x1]  }
   0x2   :  { %v141_v1 = vld [vmem:[%s262_s0 + $0x6] sm:$0x1]   ;;  %34 = vrot.lane.b32.xlu1 %v144_v3, %s175_s15  ;;  %v143_v5 = vld [vmem:[%s262_s0 + $0xc] sm:$0x1]   ;;  %v145_v7 = vld [vmem:[%s262_s0 + $0xb] sm:$0x1]  }
   0x3   :  { %v10_v2 = vsel %vm9_vm0, %v141_v1, %v140_v0  ;;  %v23_v6 = vsel %vm22_vm1, %v143_v5, %v142_v4  ;;  %s176_s20 = smov 112   ;;  %s177_s21 = smov 92   ;;  %v146_v8 = vld [vmem:[%s262_s0 + $0x4] sm:$0x1]   ;;  %v147_v9 = vld [vmem:[%s262_s0 + $0xa] sm:$0x1]  }
   0x4   :  { %11 = vrot.lane.b32.xlu0 %v10_v2, %s174_s14  ;;  %v2_v10 = vld [vmem:[%s262_s0] sm:$0x1]   ;;  %s178_s28 = smov 80   ;;  %s179_s29 = smov 72   ;;  %v148_v11 = vld [vmem:[%s262_s0 + $0x3] sm:$0x1]  }
   0x5   :  { %4 = vst.msk [vmem:[#allocation0] sm:$0x1] %vm3_vm2, %v2_v10   ;;  %v149_v12 = vld [vmem:[%s262_s0 + $0x9] sm:$0x1]   ;;  %s180_s5 = smov 60   ;;  %s181_s6 = smov 52  }
   0x6   :  { %40 = vrot.lane.b32.xlu1 %v145_v7, %s177_s21  ;;  %v150_v13 = vld [vmem:[%s262_s0 + $0xf] sm:$0x1]   ;;  %v151_v14 = vld [vmem:[%s262_s0 + $0x2] sm:$0x1]   ;;  %s182_s11 = smov 44   ;;  %s183_s12 = smov 40  }
   0x7   :  { %v152_v15 = vld [vmem:[%s262_s0 + $0x8] sm:$0x1]   ;;  %v153_v16 = vld [vmem:[%s262_s0 + $0xe] sm:$0x1]   ;;  %s184_s17 = smov 32   ;;  %s185_s18 = smov 24  }
   0x8   :  { %24 = vrot.lane.b32.xlu0 %v23_v6, %s176_s20  ;;  %v154_v17 = vld [vmem:[%s262_s0 + $0x1] sm:$0x1]   ;;  %v155_v18 = vld [vmem:[%s262_s0 + $0x7] sm:$0x1]   ;;  %s186_s23 = smov 20   ;;  %s187_s24 = smov 12  }
   0x9   :  { %v156_v19 = vld [vmem:[%s262_s0 + $0xd] sm:$0x1]   ;;  %s188_s0 = smov 4   ;;  %vm16_vm4 = vcmask 1048512   ;;  %vm36_vm5 = vcmask 982816   ;;  %vm26_vm6 = vcmask 31744  }
   0xa   :  { %53 = vrot.lane.b32.xlu1 %v147_v9, %s179_s29  ;;  %vm29_vm7 = vcmask 1048448   ;;  %vm42_vm8 = vcmask 917216   ;;  %vm49_vm9 = vcmask 818816   ;;  %vm55_vm10 = vcmask 753216  }
   0xb   :  { %vm62_vm11 = vcmask 654816   ;;  %vm68_vm12 = vcmask 589216   ;;  %vm75_vm13 = vcmask 523616   ;;  %vm82_vm14 = vcmask 490816  }
   0xc   :  { %47 = vrot.lane.b32.xlu0 %v146_v8, %s178_s28  ;;  %vm88_vm15 = vcmask 425216   ;;  %vm95_vm0 = vcmask 359616   ;;  %vm102_vm1 = vcmask 326816   ;;  %vm108_vm2 = vcmask 261216  }
   0xe   :  { %66 = vrot.lane.b32.xlu1 %v149_v12, %s181_s6 }
  0x10   :  { %60 = vrot.lane.b32.xlu0 %v148_v11, %s180_s5 }
  0x12   :  { %80 = vrot.lane.b32.xlu1 %v151_v14, %s183_s12 }
  0x14   :  { %73 = vrot.lane.b32.xlu0 %v150_v13, %s182_s11 }
  0x16   :  { %93 = vrot.lane.b32.xlu1 %v153_v16, %s185_s18 }
  0x18   :  { %86 = vrot.lane.b32.xlu0 %v152_v15, %s184_s17 }
  0x1a   :  { %106 = vrot.lane.b32.xlu1 %v155_v18, %s187_s24 }
  0x1c   :  { %100 = vrot.lane.b32.xlu0 %v154_v17, %s186_s23 }
  0x20   :  { %113 = vrot.lane.b32.xlu0 %v156_v19, %s188_s0 }
  0x74   :  { %v35_v21 = vpop.permute.xlu1 %34  }
  0x76   :  { %v12_v20 = vpop.permute.xlu0 %11  }
  0x77   :  { %15 = vst.msk [vmem:[#allocation0 + $0x8] sm:$0x1] %vm13_vm3, %v12_v20   ;;  %vm115_vm3 = vcmask 195616  }
  0x78   :  { %17 = vst.msk [vmem:[#allocation0] sm:$0x1] %vm16_vm4, %v12_v20   ;;  %v41_v23 = vpop.permute.xlu1 %40  }
  0x79   :  { %37 = vst.msk [vmem:[#allocation0] sm:$0x1] %vm36_vm5, %v35_v21  }
  0x7a   :  { %v25_v22 = vpop.permute.xlu0 %24  }
  0x7b   :  { %28 = vst.msk [vmem:[#allocation0 + $0x10] sm:$0x1] %vm26_vm6, %v25_v22  }
  0x7c   :  { %31 = vst.msk [vmem:[#allocation0 + $0x8] sm:$0x1] %vm29_vm7, %v25_v22   ;;  %v54_v25 = vpop.permute.xlu1 %53  }
  0x7d   :  { %44 = vst.msk [vmem:[#allocation0 + $0x8] sm:$0x1] %vm42_vm8, %v41_v23  }
  0x7e   :  { %v48_v24 = vpop.permute.xlu0 %47   ;;  %57 = vst.msk [vmem:[#allocation0 + $0x8] sm:$0x1] %vm55_vm10, %v54_v25  }
  0x7f   :  { %50 = vst.msk [vmem:[#allocation0] sm:$0x1] %vm49_vm9, %v48_v24  }
  0x80   :  { %v67_v27 = vpop.permute.xlu1 %66  }
  0x81   :  { %70 = vst.msk [vmem:[#allocation0 + $0x8] sm:$0x1] %vm68_vm12, %v67_v27  }
  0x82   :  { %v61_v26 = vpop.permute.xlu0 %60  }
  0x83   :  { %63 = vst.msk [vmem:[#allocation0] sm:$0x1] %vm62_vm11, %v61_v26  }
  0x84   :  { %v81_v29 = vpop.permute.xlu1 %80  }
  0x85   :  { %83 = vst.msk [vmem:[#allocation0] sm:$0x1] %vm82_vm14, %v81_v29  }
  0x86   :  { %v74_v28 = vpop.permute.xlu0 %73  }
  0x87   :  { %77 = vst.msk [vmem:[#allocation0 + $0x10] sm:$0x1] %vm75_vm13, %v74_v28  }
  0x88   :  { %v94_v31 = vpop.permute.xlu1 %93  }
  0x89   :  { %97 = vst.msk [vmem:[#allocation0 + $0x10] sm:$0x1] %vm95_vm0, %v94_v31  }
  0x8a   :  { %v87_v30 = vpop.permute.xlu0 %86  }
  0x8b   :  { %90 = vst.msk [vmem:[#allocation0 + $0x8] sm:$0x1] %vm88_vm15, %v87_v30  }
  0x8c   :  { %v107_v33 = vpop.permute.xlu1 %106  }
  0x8d   :  { %110 = vst.msk [vmem:[#allocation0 + $0x8] sm:$0x1] %vm108_vm2, %v107_v33  }
  0x8e   :  { %v101_v32 = vpop.permute.xlu0 %100  }
  0x8f   :  { %103 = vst.msk [vmem:[#allocation0] sm:$0x1] %vm102_vm1, %v101_v32  }
  0x92   :  { %v114_v34 = vpop.permute.xlu0 %113  }
  0x93   :  { %117 = vst.msk [vmem:[#allocation0 + $0x10] sm:$0x1] %vm115_vm3, %v114_v34  }
  0x94   :  { %v127_v36 = vld [vmem:[#allocation0 + $0x8] sm:$0x1] }
  0x95   :  { %157 = vst [vmem:[%s263_s1 + $0x1] sm:$0x1] %v127_v36 }
  0x96   :  { %v122_v35 = vld [vmem:[#allocation0] sm:$0x1] }
  0x97   :  { %125 = vst [vmem:[%s263_s1] sm:$0x1] %v122_v35 }
  0x9a   :  { %v133_v37 = vld [vmem:[#allocation0 + $0x10] sm:$0x1] }
  0x9b   :  { %158 = vst [vmem:[%s263_s1 + $0x2] sm:$0x1] %v133_v37 }

// kernel: cell_dis_auto_forward.1
= control target key start
LH: loop header
LB: loop body
LE: loop exit
PB: predicated region body
PF: predicated region fallthrough
CT: control target
= control target key end

     0   :  { %s1679_s18 = smov 0   ;;  %s2354_s0 = inlined_call_operand.vmem [shape: f32[2,8,420], index: 0, kind: input, shape index: {}]   ;;  %s2355_s1 = inlined_call_operand.vmem [shape: f32[8,200], index: 1, kind: input, shape index: {}]   ;;  %s2356_s2 = inlined_call_operand.vmem [shape: f32[8,208], index: 2, kind: input, shape index: {}]   ;;  %s2357_s3 = inlined_call_operand.vmem [shape: f32[8,2], index: 3, kind: input, shape index: {}]   ;;  %s2358_s4 = inlined_call_operand.vmem [shape: f32[1,320], index: 4, kind: input, shape index: {}]   ;;  %s2359_s5 = inlined_call_operand.vmem [shape: f32[2,8,320], index: 5, kind: output, shape index: {}]  }
   0x1 LB: > { %s1558_s19 = sadd.s32 4294967295, %s1619_s18   ;;  %p1562_p0 = scmp.ge.s32.totalorder %s1619_s18, 1  ;;  %s1619_s18 = sphi %s1679_s18, %s15_s18  }
   0x2   : > { %p187_p1 = scmp.lt.s32.totalorder %s1619_s18, 3 }
   0x4   : > { %p188_p2 = pnand %p1562_p0, %p187_p1 }
   0x5   : > { %p215_p3 = scmp.lt.s32.totalorder (!%p188_p2), %s1558_s19, 1  ;;  %s1622_s24 = smov (!%p188_p2), 68  }
   0x6   : > { %191 = sbr.rel (%p188_p2) target bundleno = 1078 (0x436), region = 40  ;;  %s1623_s25 = smov (!%p188_p2), 84  }
   0x7   : > { %s1624_s26 = smov (!%p188_p2), 85   ;;  %s1625_s27 = smov (!%p188_p2), 86  }
   0x8   : > { %s1626_s28 = smov (!%p188_p2), 87   ;;  %s1627_s29 = smov (!%p188_p2), 88  }
   0x9   : > { %s1628_s30 = smov (!%p188_p2), 104   ;;  %s1629_s6 = smov (!%p188_p2), 105  }
   0xa   : > { %s1630_s7 = smov (!%p188_p2), 106   ;;  %s1631_s8 = smov (!%p188_p2), 107  }
   0xb   : > { %s2407_s19 = smov (!%p215_p3, %s1558_s19), 1  ;;  %v1621_v3 = vmov 0.0   ;;  %vm236_vm0 = vcmask 523264   ;;  %s1632_s9 = smov 108   ;;  %vm457_vm1 = vcmask 556032   ;;  %vm442_vm2 = vcmask 687104  }
   0xc   : > { %s1572_s20 = sshll.u32 %s2407_s19, 5  ;;  %774 = vmatprep.subr.mxu1 %v1621_v3  ;;  %s1633_s10 = smov 124   ;;  %vm427_vm3 = vcmask 695296   ;;  %vm412_vm4 = vcmask 703488   ;;  %vm397_vm5 = vcmask 711680   ;;  %v617_v35 = vld [vmem:[%s2355_s1 + $0x8] sm:$0xff] }
   0xd   : > { %s1693_s23 = scalar_lea.vmem %s2354_s0, %s1572_s20  ;;  %s1634_s11 = smov 125   ;;  %vm699_vm6 = vcmask 588800   ;;  %vm382_vm7 = vcmask 719872   ;;  %vm870_vm8 = vcmask 293888   ;;  %v1645_v43 = vmov 0   ;;  %v693_v48 = vld [vmem:[%s2357_s3] sm:$0xff] }
   0xe   : > { %v1696_v0 = vld [vmem:[%s1693_s23 + $0x8] sm:$0xff]  ;;  %v1699_v1 = vld [vmem:[%s1693_s23] sm:$0xff]  ;;  %v1702_v2 = vld [vmem:[%s1693_s23 + $0x10] sm:$0xff]  ;;  %s1635_s12 = smov 126   ;;  %s2362_s13 = smov 127   ;;  %1567 = vmatprep.mubr.msk.f32.mxu1 %vm699_vm6, %v617_v35  ;;  %1566 = vmatprep.mubr.msk.f32.mxu0 %vm699_vm6, %v617_v35  ;;  %871 = vst.msk [vmem:[#allocation3 + $0x18] sm:$0xff] %vm870_vm8, %v1621_v3 }
   0xf   : > { %v1706_v4 = vmax.f32 %v1696_v0, 0.0  ;;  %v1709_v5 = vmax.f32 %v1699_v1, 0.0  ;;  %v1712_v6 = vmax.f32 %v1702_v2, 0.0  ;;  %s1637_s14 = smov 44   ;;  %v228_v7 = vld [vmem:[%s1693_s23 + $0x18] sm:$0xff]  ;;  %s1638_s15 = smov 45   ;;  %1610 = vset.pattern.permute.xlu1 %v1645_v43 }
  0x10   : > { %v232_v8 = vmax.f32 %v228_v7, 0.0  ;;  %s1639_s16 = smov 46   ;;  %s1640_s17 = smov 47   ;;  %vm367_vm9 = vcmask 850944   ;;  %vm352_vm10 = vcmask 859136   ;;  %vm337_vm11 = vcmask 867328  }
  0x11   : > { %453 = vrot.lane.b32.xlu0 %v1706_v4, %s1622_s24  ;;  %451 = vrot.lane.b32.xlu1 %v1709_v5, %s1622_s24  ;;  %237 = vst.msk [vmem:[#allocation2 + $0x10] sm:$0xff] %vm236_vm0, %v1712_v6  ;;  %s1641_s20 = smov 48   ;;  %s2360_s21 = smov 64   ;;  %vm322_vm12 = vcmask 875520   ;;  %vm307_vm13 = vcmask 883712   ;;  %vm2367_vm14 = vcmask 1014784  }
  0x12   : > { %s2364_s22 = smov 65   ;;  %s1644_s23 = smov 66   ;;  %vm277_vm15 = vcmask 1022976   ;;  %vm2366_vm6 = vcmask 1031168   ;;  %vm2368_vm8 = vcmask 1039360  }
  0x15   : > { %455 = vrot.lane.b32.xlu0 %v1712_v6, %s1622_s24  ;;  %438 = vrot.lane.b32.xlu1 %v1706_v4, %s1623_s25  ;;  %v893_v57 = vld [vmem:[#allocation3 + $0x18] sm:$0xff] }
  0x19   : > { %440 = vrot.lane.b32.xlu0 %v1712_v6, %s1623_s25  ;;  %436 = vrot.lane.b32.xlu1 %v1709_v5, %s1623_s25 }
  0x1d   : > { %423 = vrot.lane.b32.xlu0 %v1706_v4, %s1624_s26  ;;  %425 = vrot.lane.b32.xlu1 %v1712_v6, %s1624_s26 }
  0x21   : > { %421 = vrot.lane.b32.xlu0 %v1709_v5, %s1624_s26  ;;  %408 = vrot.lane.b32.xlu1 %v1706_v4, %s1625_s27 }
  0x25   : > { %410 = vrot.lane.b32.xlu0 %v1712_v6, %s1625_s27  ;;  %406 = vrot.lane.b32.xlu1 %v1709_v5, %s1625_s27 }
  0x29   : > { %393 = vrot.lane.b32.xlu0 %v1706_v4, %s1626_s28  ;;  %395 = vrot.lane.b32.xlu1 %v1712_v6, %s1626_s28 }
  0x2d   : > { %391 = vrot.lane.b32.xlu0 %v1709_v5, %s1626_s28  ;;  %378 = vrot.lane.b32.xlu1 %v1706_v4, %s1627_s29 }
  0x31   : > { %380 = vrot.lane.b32.xlu0 %v1712_v6, %s1627_s29  ;;  %376 = vrot.lane.b32.xlu1 %v1709_v5, %s1627_s29 }
  0x35   : > { %363 = vrot.lane.b32.xlu0 %v1706_v4, %s1628_s30  ;;  %365 = vrot.lane.b32.xlu1 %v1712_v6, %s1628_s30 }
  0x39   : > { %361 = vrot.lane.b32.xlu0 %v1709_v5, %s1628_s30  ;;  %348 = vrot.lane.b32.xlu1 %v1706_v4, %s1629_s6 }
  0x3d   : > { %350 = vrot.lane.b32.xlu0 %v1712_v6, %s1629_s6  ;;  %346 = vrot.lane.b32.xlu1 %v1709_v5, %s1629_s6 }
  0x41   : > { %333 = vrot.lane.b32.xlu0 %v1706_v4, %s1630_s7  ;;  %335 = vrot.lane.b32.xlu1 %v1712_v6, %s1630_s7 }
  0x45   : > { %331 = vrot.lane.b32.xlu0 %v1709_v5, %s1630_s7  ;;  %318 = vrot.lane.b32.xlu1 %v1706_v4, %s1631_s8 }
  0x49   : > { %320 = vrot.lane.b32.xlu0 %v1712_v6, %s1631_s8  ;;  %316 = vrot.lane.b32.xlu1 %v1709_v5, %s1631_s8 }
  0x4d   : > { %303 = vrot.lane.b32.xlu0 %v1706_v4, %s1632_s9  ;;  %305 = vrot.lane.b32.xlu1 %v1712_v6, %s1632_s9 }
  0x51   : > { %301 = vrot.lane.b32.xlu0 %v1709_v5, %s1632_s9  ;;  %288 = vrot.lane.b32.xlu1 %v1706_v4, %s1633_s10 }
  0x55   : > { %290 = vrot.lane.b32.xlu0 %v1712_v6, %s1633_s10  ;;  %286 = vrot.lane.b32.xlu1 %v1709_v5, %s1633_s10 }
  0x59   : > { %273 = vrot.lane.b32.xlu0 %v1706_v4, %s1634_s11  ;;  %275 = vrot.lane.b32.xlu1 %v1712_v6, %s1634_s11 }
  0x5d   : > { %271 = vrot.lane.b32.xlu0 %v1709_v5, %s1634_s11  ;;  %258 = vrot.lane.b32.xlu1 %v1706_v4, %s1635_s12 }
  0x61   : > { %260 = vrot.lane.b32.xlu0 %v1712_v6, %s1635_s12  ;;  %256 = vrot.lane.b32.xlu1 %v1709_v5, %s1635_s12 }
  0x65   : > { %243 = vrot.lane.b32.xlu0 %v1706_v4, %s2362_s13  ;;  %245 = vrot.lane.b32.xlu1 %v1712_v6, %s2362_s13 }
  0x69   : > { %241 = vrot.lane.b32.xlu0 %v1709_v5, %s2362_s13  ;;  %600 = vrot.lane.b32.xlu1 %v1706_v4, %s1637_s14  ;;  %s2376_s13 = smov 67  }
  0x6d   : > { %602 = vrot.lane.b32.xlu0 %v1712_v6, %s1637_s14  ;;  %598 = vrot.lane.b32.xlu1 %v1709_v5, %s1637_s14 }
  0x71   : > { %582 = vrot.lane.b32.xlu0 %v1706_v4, %s1638_s15  ;;  %584 = vrot.lane.b32.xlu1 %v1712_v6, %s1638_s15 }
  0x75   : > { %580 = vrot.lane.b32.xlu0 %v1709_v5, %s1638_s15  ;;  %604 = vrot.lane.b32.xlu1 %v232_v8, %s1637_s14 }
  0x79   : > { %564 = vrot.lane.b32.xlu0 %v1706_v4, %s1639_s16  ;;  %566 = vrot.lane.b32.xlu1 %v1712_v6, %s1639_s16 }
  0x7d   : > { %562 = vrot.lane.b32.xlu0 %v1709_v5, %s1639_s16  ;;  %586 = vrot.lane.b32.xlu1 %v232_v8, %s1638_s15 }
  0x81   : > { %546 = vrot.lane.b32.xlu0 %v1706_v4, %s1640_s17  ;;  %548 = vrot.lane.b32.xlu1 %v1712_v6, %s1640_s17 }
  0x83   : > { %v454_v9 = vpop.permute.xlu0 %453  ;;  %v452_v10 = vpop.permute.xlu1 %451 }
  0x84   : > { %v458_v14 = vsel %vm457_vm1, %v452_v10, %v454_v9 }
  0x85   : > { %544 = vrot.lane.b32.xlu0 %v1709_v5, %s1640_s17  ;;  %568 = vrot.lane.b32.xlu1 %v232_v8, %s1639_s16 }
  0x87   : > { %v456_v11 = vpop.permute.xlu0 %455  ;;  %v439_v12 = vpop.permute.xlu1 %438 }
  0x88   : > { %v459_v13 = vsel %vm457_vm1, %v454_v9, %v456_v11  ;;  %465 = vst.msk [vmem:[#allocation2 + $0x178] sm:$0xff] %vm236_vm0, %v456_v11 }
  0x89   : > { %528 = vrot.lane.b32.xlu0 %v1706_v4, %s1641_s20  ;;  %530 = vrot.lane.b32.xlu1 %v1712_v6, %s1641_s20 }
  0x8a   : > { %703 = vmatprep.subr.mxu0 %v459_v13 }
  0x8b   : > { %v441_v15 = vpop.permute.xlu0 %440  ;;  %v437_v16 = vpop.permute.xlu1 %436  ;;  %704 = vmatpush1.msra.mxu0 %v458_v14 }
  0x8c   : > { %v444_v17 = vsel %vm442_vm2, %v439_v12, %v441_v15  ;;  %450 = vst.msk [vmem:[#allocation2 + $0x160] sm:$0xff] %vm236_vm0, %v441_v15  ;;  %v443_v18 = vsel %vm442_vm2, %v437_v16, %v439_v12 }
  0x8d   : > { %526 = vrot.lane.b32.xlu0 %v1709_v5, %s1641_s20  ;;  %550 = vrot.lane.b32.xlu1 %v232_v8, %s1640_s17 }
  0x8e   : > { %705 = vmatprep.subr.mxu0 %v444_v17 }
  0x8f   : > { %v424_v19 = vpop.permute.xlu0 %423  ;;  %v426_v20 = vpop.permute.xlu1 %425  ;;  %v665_v21 = vld [vmem:[#allocation2 + $0x178] sm:$0xff]  ;;  %706 = vmatpush1.msra.mxu0 %v443_v18 }
  0x90   : > { %v429_v22 = vsel %vm427_vm3, %v424_v19, %v426_v20  ;;  %435 = vst.msk [vmem:[#allocation2 + $0x148] sm:$0xff] %vm236_vm0, %v426_v20  ;;  %775 = vmatpush1.msra.mxu1 %v665_v21 }
  0x91   : > { %513 = vrot.lane.b32.xlu0 %v1706_v4, %s2360_s21  ;;  %515 = vrot.lane.b32.xlu1 %v1712_v6, %s2360_s21 }
  0x92   : > { %776 = vmatprep.subr.mxu1 %v1621_v3  ;;  %707 = vmatprep.subr.mxu0 %v429_v22 }
  0x93   : > { %v422_v23 = vpop.permute.xlu0 %421  ;;  %v409_v24 = vpop.permute.xlu1 %408  ;;  %v662_v25 = vld [vmem:[#allocation2 + $0x160] sm:$0xff] }
  0x94   : > { %v428_v26 = vsel %vm427_vm3, %v422_v23, %v424_v19  ;;  %777 = vmatpush1.msra.mxu1 %v662_v25 }
  0x95   : > { %511 = vrot.lane.b32.xlu0 %v1709_v5, %s2360_s21  ;;  %532 = vrot.lane.b32.xlu1 %v232_v8, %s1641_s20  ;;  %s2380_s21 = smov 65  }
  0x96   : > { %778 = vmatprep.subr.mxu1 %v1621_v3  ;;  %708 = vmatpush1.msra.mxu0 %v428_v26 }
  0x97   : > { %v411_v27 = vpop.permute.xlu0 %410  ;;  %v407_v28 = vpop.permute.xlu1 %406  ;;  %v659_v29 = vld [vmem:[#allocation2 + $0x148] sm:$0xff] }
  0x98   : > { %v414_v30 = vsel %vm412_vm4, %v409_v24, %v411_v27  ;;  %420 = vst.msk [vmem:[#allocation2 + $0x130] sm:$0xff] %vm236_vm0, %v411_v27  ;;  %v413_v31 = vsel %vm412_vm4, %v407_v28, %v409_v24  ;;  %779 = vmatpush1.msra.mxu1 %v659_v29 }
  0x99   : > { %498 = vrot.lane.b32.xlu0 %v1706_v4, %s2364_s22  ;;  %500 = vrot.lane.b32.xlu1 %v1712_v6, %s2364_s22 }
  0x9a   : > { %780 = vmatprep.subr.mxu1 %v1621_v3  ;;  %709 = vmatprep.subr.mxu0 %v414_v30 }
  0x9b   : > { %v394_v32 = vpop.permute.xlu0 %393  ;;  %v396_v33 = vpop.permute.xlu1 %395  ;;  %710 = vmatpush1.msra.mxu0 %v413_v31 }
  0x9c   : > { %v399_v34 = vsel %vm397_vm5, %v394_v32, %v396_v33  ;;  %405 = vst.msk [vmem:[#allocation2 + $0x118] sm:$0xff] %vm236_vm0, %v396_v33 }
  0x9d   : > { %496 = vrot.lane.b32.xlu0 %v1709_v5, %s2364_s22  ;;  %483 = vrot.lane.b32.xlu1 %v1706_v4, %s1644_s23  ;;  %s2379_s22 = smov 64  }
  0x9e   : > { %711 = vmatprep.subr.mxu0 %v399_v34 }
  0x9f   : > { %v392_v36 = vpop.permute.xlu0 %391  ;;  %v379_v37 = vpop.permute.xlu1 %378  ;;  %v656_v38 = vld [vmem:[#allocation2 + $0x130] sm:$0xff] }
  0xa0   : > { %v398_v39 = vsel %vm397_vm5, %v392_v36, %v394_v32  ;;  %781 = vmatpush1.msra.mxu1 %v656_v38 }
  0xa1   : > { %485 = vrot.lane.b32.xlu0 %v1712_v6, %s1644_s23  ;;  %481 = vrot.lane.b32.xlu1 %v1709_v5, %s1644_s23 }
  0xa2   : > { %782 = vmatprep.subr.mxu1 %v1621_v3  ;;  %712 = vmatpush1.msra.mxu0 %v398_v39 }
  0xa3   : > { %v381_v40 = vpop.permute.xlu0 %380  ;;  %v377_v41 = vpop.permute.xlu1 %376  ;;  %v653_v42 = vld [vmem:[#allocation2 + $0x118] sm:$0xff] }
  0xa4   : > { %v384_v44 = vsel %vm382_vm7, %v379_v37, %v381_v40  ;;  %390 = vst.msk [vmem:[#allocation2 + $0x100] sm:$0xff] %vm236_vm0, %v381_v40  ;;  %v383_v45 = vsel %vm382_vm7, %v377_v41, %v379_v37  ;;  %783 = vmatpush1.msra.mxu1 %v653_v42 }
  0xa5   : > { %468 = vrot.lane.b32.xlu0 %v1706_v4, %s2376_s13  ;;  %470 = vrot.lane.b32.xlu1 %v1712_v6, %s2376_s13 }
  0xa6   : > { %784 = vmatprep.subr.mxu1 %v1621_v3  ;;  %713 = vmatprep.subr.mxu0 %v384_v44 }
  0xa7   : > { %v364_v46 = vpop.permute.xlu0 %363  ;;  %v366_v47 = vpop.permute.xlu1 %365  ;;  %714 = vmatpush1.msra.mxu0 %v383_v45  ;;  %v620_v45 = vld [vmem:[#allocation2 + $0x10] sm:$0xff] }
  0xa8   : > { %v369_v49 = vsel %vm367_vm9, %v364_v46, %v366_v47  ;;  %375 = vst.msk [vmem:[#allocation2 + $0xe8] sm:$0xff] %vm236_vm0, %v366_v47 }
  0xa9   : > { %466 = vrot.lane.b32.xlu0 %v1709_v5, %s2376_s13  ;;  %715 = vmatprep.subr.mxu0 %v369_v49  ;;  %s1647_s13 = smov 42  }
  0xaa   : > { %696 = vperm.xlu1 %1610, %v693_v48  }
  0xab   : > { %v362_v50 = vpop.permute.xlu0 %361  ;;  %v349_v51 = vpop.permute.xlu1 %348  ;;  %v650_v52 = vld [vmem:[#allocation2 + $0x100] sm:$0xff] }
  0xac   : > { %v368_v53 = vsel %vm367_vm9, %v362_v50, %v364_v46  ;;  %785 = vmatpush1.msra.mxu1 %v650_v52 }
  0xad   : > { %786 = vmatprep.subr.mxu1 %v1621_v3  ;;  %716 = vmatpush1.msra.mxu0 %v368_v53 }
  0xae   : > { %1259 = vrot.lane.b32.xlu1 %v1702_v2, %s1625_s27  ;;  %1257 = vrot.lane.b32.xlu0 %v1696_v0, %s1625_s27 }
  0xaf   : > { %v351_v54 = vpop.permute.xlu0 %350  ;;  %v347_v55 = vpop.permute.xlu1 %346  ;;  %v647_v56 = vld [vmem:[#allocation2 + $0xe8] sm:$0xff] }
  0xb0   : > { %v354_v58 = vsel %vm352_vm10, %v349_v51, %v351_v54  ;;  %360 = vst.msk [vmem:[#allocation2 + $0xd0] sm:$0xff] %vm236_vm0, %v351_v54  ;;  %v353_v59 = vsel %vm352_vm10, %v347_v55, %v349_v51  ;;  %787 = vmatpush1.msra.mxu1 %v647_v56 }
  0xb1   : > { %788 = vmatprep.subr.mxu1 %v1621_v3  ;;  %717 = vmatprep.subr.mxu0 %v354_v58 }
  0xb2   : > { %718 = vmatpush1.msra.mxu0 %v353_v59  ;;  %1241 = vrot.lane.b32.xlu1 %v893_v57, %s1637_s14 }
  0xb3   : > { %v334_v60 = vpop.permute.xlu0 %333  ;;  %v336_v61 = vpop.permute.xlu1 %335  ;;  %1255 = vrot.lane.b32.xlu0 %v1699_v1, %s1625_s27 }
  0xb4   : > { %v339_v62 = vsel %vm337_vm11, %v334_v60, %v336_v61  ;;  %345 = vst.msk [vmem:[#allocation2 + $0xb8] sm:$0xff] %vm236_vm0, %v336_v61 }
  0xb5   : > { %719 = vmatprep.subr.mxu0 %v339_v62 }
  0xb6   : > { %1224 = vrot.lane.b32.xlu1 %v893_v57, %s1638_s15 }
  0xb7   : > { %v332_v63 = vpop.permute.xlu0 %331  ;;  %v319_v0 = vpop.permute.xlu1 %318  ;;  %v644_v2 = vld [vmem:[#allocation2 + $0xd0] sm:$0xff] }
  0xb8   : > { %v338_v6 = vsel %vm337_vm11, %v332_v63, %v334_v60  ;;  %789 = vmatpush1.msra.mxu1 %v644_v2 }
  0xb9   : > { %790 = vmatprep.subr.mxu1 %v1621_v3  ;;  %720 = vmatpush1.msra.mxu0 %v338_v6 }
  0xba   : > { %1207 = vrot.lane.b32.xlu1 %v893_v57, %s1639_s16 }
  0xbb   : > { %v321_v1 = vpop.permute.xlu0 %320  ;;  %v317_v7 = vpop.permute.xlu1 %316  ;;  %v641_v8 = vld [vmem:[#allocation2 + $0xb8] sm:$0xff] }
  0xbc   : > { %v324_v9 = vsel %vm322_vm12, %v319_v0, %v321_v1  ;;  %330 = vst.msk [vmem:[#allocation2 + $0xa0] sm:$0xff] %vm236_vm0, %v321_v1  ;;  %v323_v10 = vsel %vm322_vm12, %v317_v7, %v319_v0  ;;  %791 = vmatpush1.msra.mxu1 %v641_v8 }
  0xbd   : > { %792 = vmatprep.subr.mxu1 %v1621_v3  ;;  %721 = vmatprep.subr.mxu0 %v324_v9 }
  0xbe   : > { %722 = vmatpush1.msra.mxu0 %v323_v10  ;;  %1190 = vrot.lane.b32.xlu1 %v893_v57, %s1640_s17 }
  0xbf   : > { %v304_v11 = vpop.permute.xlu0 %303  ;;  %v306_v12 = vpop.permute.xlu1 %305 }
  0xc0   : > { %v309_v13 = vsel %vm307_vm13, %v304_v11, %v306_v12  ;;  %315 = vst.msk [vmem:[#allocation2 + $0x88] sm:$0xff] %vm236_vm0, %v306_v12 }
  0xc1   : > { %723 = vmatprep.subr.mxu0 %v309_v13 }
  0xc2   : > { %1173 = vrot.lane.b32.xlu1 %v893_v57, %s1641_s20 }
  0xc3   : > { %v302_v14 = vpop.permute.xlu0 %301  ;;  %v289_v15 = vpop.permute.xlu1 %288  ;;  %v638_v16 = vld [vmem:[#allocation2 + $0xa0] sm:$0xff] }
  0xc4   : > { %v308_v17 = vsel %vm307_vm13, %v302_v14, %v304_v11  ;;  %793 = vmatpush1.msra.mxu1 %v638_v16 }
  0xc5   : > { %794 = vmatprep.subr.mxu1 %v1621_v3  ;;  %724 = vmatpush1.msra.mxu0 %v308_v17 }
  0xc7   : > { %v291_v18 = vpop.permute.xlu0 %290  ;;  %v287_v19 = vpop.permute.xlu1 %286  ;;  %v635_v20 = vld [vmem:[#allocation2 + $0x88] sm:$0xff] }
  0xc8   : > { %v294_v21 = vsel %vm2367_vm14, %v289_v15, %v291_v18  ;;  %300 = vst.msk [vmem:[#allocation2 + $0x70] sm:$0xff] %vm236_vm0, %v291_v18  ;;  %v293_v22 = vsel %vm2367_vm14, %v287_v19, %v289_v15  ;;  %795 = vmatpush1.msra.mxu1 %v635_v20  ;;  %vm2370_vm14 = vcmask 367616  }
  0xc9   : > { %796 = vmatprep.subr.mxu1 %v1621_v3  ;;  %725 = vmatprep.subr.mxu0 %v294_v21 }
  0xca   : > { %726 = vmatpush1.msra.mxu0 %v293_v22 }
  0xcb   : > { %v274_v23 = vpop.permute.xlu0 %273  ;;  %v276_v24 = vpop.permute.xlu1 %275 }
  0xcc   : > { %v279_v25 = vsel %vm277_vm15, %v274_v23, %v276_v24  ;;  %285 = vst.msk [vmem:[#allocation2 + $0x58] sm:$0xff] %vm236_vm0, %v276_v24 }
  0xcd   : > { %727 = vmatprep.subr.mxu0 %v279_v25 }
  0xcf   : > { %v272_v26 = vpop.permute.xlu0 %271  ;;  %v259_v27 = vpop.permute.xlu1 %258  ;;  %v632_v28 = vld [vmem:[#allocation2 + $0x70] sm:$0xff] }
  0xd0   : > { %v278_v29 = vsel %vm277_vm15, %v272_v26, %v274_v23  ;;  %797 = vmatpush1.msra.mxu1 %v632_v28 }
  0xd1   : > { %798 = vmatprep.subr.mxu1 %v1621_v3  ;;  %728 = vmatpush1.msra.mxu0 %v278_v29 }
  0xd3   : > { %v261_v30 = vpop.permute.xlu0 %260  ;;  %v257_v31 = vpop.permute.xlu1 %256  ;;  %v629_v32 = vld [vmem:[#allocation2 + $0x58] sm:$0xff] }
  0xd4   : > { %v264_v33 = vsel %vm2366_vm6, %v259_v27, %v261_v30  ;;  %270 = vst.msk [vmem:[#allocation2 + $0x40] sm:$0xff] %vm236_vm0, %v261_v30  ;;  %v263_v34 = vsel %vm2366_vm6, %v257_v31, %v259_v27  ;;  %799 = vmatpush1.msra.mxu1 %v629_v32  ;;  %vm2369_vm6 = vcmask 359424  }
  0xd5   : > { %800 = vmatprep.subr.mxu1 %v1621_v3  ;;  %729 = vmatprep.subr.mxu0 %v264_v33 }
  0xd6   : > { %730 = vmatpush1.msra.mxu0 %v263_v34 }
  0xd7   : > { %v244_v35 = vpop.permute.xlu0 %243  ;;  %v246_v36 = vpop.permute.xlu1 %245 }
  0xd8   : > { %v249_v37 = vsel %vm2368_vm8, %v244_v35, %v246_v36  ;;  %255 = vst.msk [vmem:[#allocation2 + $0x28] sm:$0xff] %vm236_vm0, %v246_v36 }
  0xd9   : > { %731 = vmatprep.subr.mxu0 %v249_v37 }
  0xdb   : > { %v242_v38 = vpop.permute.xlu0 %241  ;;  %v601_v39 = vpop.permute.xlu1 %600  ;;  %v626_v40 = vld [vmem:[#allocation2 + $0x40] sm:$0xff] }
  0xdc   : > { %v248_v41 = vsel %vm2368_vm8, %v242_v38, %v244_v35  ;;  %801 = vmatpush1.msra.mxu1 %v626_v40  ;;  %vm570_vm8 = vcmask 375808  }
  0xdd   : > { %802 = vmatprep.subr.mxu1 %v1621_v3  ;;  %732 = vmatpush1.msra.mxu0 %v248_v41 }
  0xde   : > { %733 = vmatprep.subr.mxu0 %v1706_v4 }
  0xdf   : > { %v603_v42 = vpop.permute.xlu0 %602  ;;  %v599_v43 = vpop.permute.xlu1 %598  ;;  %v623_v44 = vld [vmem:[#allocation2 + $0x28] sm:$0xff]  ;;  %734 = vmatpush1.msra.mxu0 %v1709_v5 }
  0xe0   : > { %v608_v46 = vsel %vm2369_vm6, %v601_v39, %v603_v42  ;;  %v607_v47 = vsel %vm2369_vm6, %v599_v43, %v601_v39  ;;  %803 = vmatpush1.msra.mxu1 %v623_v44 }
  0xe1   : > { %749 = vmatprep.subr.mxu0 %v608_v46  ;;  %804 = vmatprep.subr.mxu1 %v1621_v3 }
  0xe2   : > { %750 = vmatpush2.msra.mxu0 %v607_v47  ;;  %805 = vmatpush1.msra.mxu1 %v620_v45 }
  0xe3   : > { %v583_v48 = vpop.permute.xlu0 %582  ;;  %v585_v49 = vpop.permute.xlu1 %584  ;;  %820 = vmatprep.subr.mxu1 %v1621_v3 }
  0xe4   : > { %v590_v4 = vsel %vm2370_vm14, %v583_v48, %v585_v49 }
  0xe5   : > { %751 = vmatprep.subr.mxu0 %v590_v4 }
  0xe7   : > { %v581_v5 = vpop.permute.xlu0 %580  ;;  %v605_v50 = vpop.permute.xlu1 %604 }
  0xe8   : > { %v589_v51 = vsel %vm2370_vm14, %v581_v5, %v583_v48  ;;  %v609_v52 = vsel %vm2369_vm6, %v603_v42, %v605_v50  ;;  %vm2371_vm6 = vcmask 384000   ;;  %v616_v42 = vld [vmem:[%s2355_s1] sm:$0xff]  ;;  %v848_v5 = vlaneseq }
  0xe9   : > { %615 = vst.msk [vmem:[#allocation2 + $0x250] sm:$0xff] %vm236_vm0, %v609_v52  ;;  %752 = vmatpush2.msra.mxu0 %v589_v51  ;;  %v233_v52 = vld [vmem:[%s2358_s4] sm:$0x7] }
  0xea   : > { %v849_v50 = vshrl.u32 %v848_v5, 7 }
  0xeb   : > { %v565_v53 = vpop.permute.xlu0 %564  ;;  %v567_v54 = vpop.permute.xlu1 %566 }
  0xec   : > { %v572_v55 = vsel %vm570_vm8, %v565_v53, %v567_v54  ;;  %v854_v51 = vsub.s32 1, %v849_v50 }
  0xed   : > { %753 = vmatprep.subr.mxu0 %v572_v55 }
  0xef   : > { %v563_v56 = vpop.permute.xlu0 %562  ;;  %v587_v57 = vpop.permute.xlu1 %586 }
  0xf0   : > { %v571_v58 = vsel %vm570_vm8, %v563_v56, %v565_v53  ;;  %v591_v59 = vsel %vm2370_vm14, %v585_v49, %v587_v57  ;;  %v692_v60 = vld [vmem:[#allocation2 + $0x250] sm:$0xff]  ;;  %vm2372_vm14 = vcmask 392192  }
  0xf1   : > { %597 = vst.msk [vmem:[#allocation2 + $0x238] sm:$0xff] %vm236_vm0, %v591_v59  ;;  %821 = vmatpush2.msra.mxu1 %v692_v60  ;;  %754 = vmatpush2.msra.mxu0 %v571_v58  ;;  %v855_v58 = vrot.slane %v233_v52, %v854_v51 }
  0xf2   : > { %822 = vmatprep.subr.mxu1 %v1621_v3 }
  0xf3   : > { %v547_v61 = vpop.permute.xlu0 %546  ;;  %v549_v62 = vpop.permute.xlu1 %548 }
  0xf4   : > { %v554_v63 = vsel %vm2371_vm6, %v547_v61, %v549_v62 }
  0xf5   : > { %755 = vmatprep.subr.mxu0 %v554_v63 }
  0xf7   : > { %v545_v0 = vpop.permute.xlu0 %544  ;;  %v569_v2 = vpop.permute.xlu1 %568 }
  0xf8   : > { %v553_v6 = vsel %vm2371_vm6, %v545_v0, %v547_v61  ;;  %v573_v1 = vsel %vm570_vm8, %v567_v54, %v569_v2  ;;  %v689_v7 = vld [vmem:[#allocation2 + $0x238] sm:$0xff]  ;;  %v858_v54 = vsub.s32 2, %v849_v50  ;;  %v850_v61 = vsub.s32 0, %v849_v50 }
  0xf9   : > { %579 = vst.msk [vmem:[#allocation2 + $0x220] sm:$0xff] %vm236_vm0, %v573_v1  ;;  %823 = vmatpush2.msra.mxu1 %v689_v7  ;;  %756 = vmatpush2.msra.mxu0 %v553_v6 }
  0xfa   : > { %824 = vmatprep.subr.mxu1 %v1621_v3  ;;  %v851_v7 = vrot.slane %v233_v52, %v850_v61 }
  0xfb   : > { %v529_v8 = vpop.permute.xlu0 %528  ;;  %v531_v9 = vpop.permute.xlu1 %530 }
  0xfc   : > { %v536_v10 = vsel %vm2372_vm14, %v529_v8, %v531_v9 }
  0xfd   : > { %757 = vmatprep.subr.mxu0 %v536_v10 }
  0xff   : > { %v527_v11 = vpop.permute.xlu0 %526  ;;  %v551_v12 = vpop.permute.xlu1 %550 }
 0x100   : > { %v535_v13 = vsel %vm2372_vm14, %v527_v11, %v529_v8  ;;  %v555_v14 = vsel %vm2371_vm6, %v549_v62, %v551_v12  ;;  %v686_v15 = vld [vmem:[#allocation2 + $0x220] sm:$0xff]  ;;  %vm2373_vm6 = vcmask 531456   ;;  %v859_v62 = vrot.slane %v233_v52, %v858_v54 }
 0x101   : > { %561 = vst.msk [vmem:[#allocation2 + $0x208] sm:$0xff] %vm236_vm0, %v555_v14  ;;  %825 = vmatpush2.msra.mxu1 %v686_v15  ;;  %758 = vmatpush2.msra.mxu0 %v535_v13 }
 0x102   : > { %826 = vmatprep.subr.mxu1 %v1621_v3 }
 0x103   : > { %v514_v16 = vpop.permute.xlu0 %513  ;;  %v516_v17 = vpop.permute.xlu1 %515 }
 0x104   : > { %v518_v18 = vsel %vm236_vm0, %v514_v16, %v516_v17  ;;  %524 = vst.msk [vmem:[#allocation2 + $0x1d8] sm:$0xff] %vm236_vm0, %v516_v17 }
 0x105   : > { %759 = vmatprep.subr.mxu0 %v518_v18 }
 0x107   : > { %v512_v19 = vpop.permute.xlu0 %511  ;;  %v533_v20 = vpop.permute.xlu1 %532 }
 0x108   : > { %v517_v21 = vsel %vm236_vm0, %v512_v19, %v514_v16  ;;  %v537_v22 = vsel %vm2372_vm14, %v531_v9, %v533_v20  ;;  %v683_v23 = vld [vmem:[#allocation2 + $0x208] sm:$0xff]  ;;  %vm2375_vm14 = vcmask 539648  }
 0x109   : > { %543 = vst.msk [vmem:[#allocation2 + $0x1f0] sm:$0xff] %vm236_vm0, %v537_v22  ;;  %827 = vmatpush2.msra.mxu1 %v683_v23  ;;  %760 = vmatpush2.msra.mxu0 %v517_v21 }
 0x10a   : > { %828 = vmatprep.subr.mxu1 %v1621_v3 }
 0x10b   : > { %v499_v24 = vpop.permute.xlu0 %498  ;;  %v501_v25 = vpop.permute.xlu1 %500  ;;  %v677_v31 = vld [vmem:[#allocation2 + $0x1d8] sm:$0xff] }
 0x10c   : > { %v504_v26 = vsel %vm2373_vm6, %v499_v24, %v501_v25  ;;  %510 = vst.msk [vmem:[#allocation2 + $0x1c0] sm:$0xff] %vm236_vm0, %v501_v25 }
 0x10d   : > { %761 = vmatprep.subr.mxu0 %v504_v26 }
 0x10f   : > { %v497_v27 = vpop.permute.xlu0 %496  ;;  %v484_v28 = vpop.permute.xlu1 %483 }
 0x110   : > { %v503_v29 = vsel %vm2373_vm6, %v497_v27, %v499_v24  ;;  %v680_v30 = vld [vmem:[#allocation2 + $0x1f0] sm:$0xff]  ;;  %vm2374_vm6 = vcmask 547840  }
 0x111   : > { %829 = vmatpush2.msra.mxu1 %v680_v30  ;;  %762 = vmatpush2.msra.mxu0 %v503_v29 }
 0x112   : > { %830 = vmatprep.subr.mxu1 %v1621_v3 }
 0x113   : > { %v486_v32 = vpop.permute.xlu0 %485  ;;  %831 = vmatpush2.msra.mxu1 %v677_v31  ;;  %v482_v33 = vpop.permute.xlu1 %481  ;;  %v674_v34 = vld [vmem:[#allocation2 + $0x1c0] sm:$0xff] }
 0x114   : > { %v489_v35 = vsel %vm2375_vm14, %v484_v28, %v486_v32  ;;  %495 = vst.msk [vmem:[#allocation2 + $0x1a8] sm:$0xff] %vm236_vm0, %v486_v32  ;;  %v488_v36 = vsel %vm2375_vm14, %v482_v33, %v484_v28  ;;  %832 = vmatprep.subr.mxu1 %v1621_v3  ;;  %vm868_vm14 = vcmask 1048400  }
 0x115   : > { %833 = vmatpush2.msra.mxu1 %v674_v34  ;;  %763 = vmatprep.subr.mxu0 %v489_v35  ;;  %869 = vst.msk [vmem:[#allocation3 + $0x10] sm:$0xff] %vm868_vm14, %v1621_v3  ;;  %vm886_vm14 = vcmask 1047888   ;;  %v1270_v34 = vld [vmem:[%s2356_s2 + $0x8] sm:$0xff] }
 0x116   : > { %834 = vmatprep.subr.mxu1 %v1621_v3  ;;  %764 = vmatpush2.msra.mxu0 %v488_v36 }
 0x117   : > { %v469_v37 = vpop.permute.xlu0 %468  ;;  %v471_v38 = vpop.permute.xlu1 %470 }
 0x118   : > { %v474_v39 = vsel %vm2374_vm6, %v469_v37, %v471_v38  ;;  %480 = vst.msk [vmem:[#allocation2 + $0x190] sm:$0xff] %vm236_vm0, %v471_v38  ;;  %v1648_v38 = vmov 1  }
 0x119   : > { %765 = vmatprep.subr.mxu0 %v474_v39  ;;  %1611 = vset.pattern.permute.xlu1 %v1648_v38 }
 0x11a   : > { %1612 = vset.pattern.permute.xlu0 %v1648_v38 }
 0x11b   : > { %v467_v40 = vpop.permute.xlu0 %466  ;;  %v671_v41 = vld [vmem:[#allocation2 + $0x1a8] sm:$0xff] }
 0x11c   : > { %v473_v43 = vsel %vm2374_vm6, %v467_v40, %v469_v37  ;;  %835 = vmatpush2.msra.mxu1 %v671_v41  ;;  %vm866_vm6 = vcmask 343040   ;;  %v1349_v37 = vld [vmem:[%s2357_s3] sm:$0xff] }
 0x11d   : > { %836 = vmatprep.subr.mxu1 %v1621_v3  ;;  %766 = vmatpush2.msra.mxu0 %v473_v43  ;;  %867 = vst.msk [vmem:[#allocation3] sm:$0xff] %vm866_vm6, %v1621_v3 }
 0x11e   : > { %768 = vmatmul.mubr.f32.vlgmr.msra.gmra.mxu0 %v616_v42 }
 0x11f   : > { %v668_v44 = vld [vmem:[#allocation2 + $0x190] sm:$0xff] }
 0x120   : > { %837 = vmatpush2.msra.mxu1 %v668_v44  ;;  %v1258_v47 = vpop.permute.xlu0 %1257 }
 0x121   : > { %839 = vmatmul.mubr.f32.vlgmr.msra.gmra.mxu1 %v616_v42  ;;  %1430 = vmatprep.subr.mxu1 %v1621_v3 }
 0x125   : > { %v697_v45 = vpop.permute.xlu1 %696  ;;  %v1256_v49 = vpop.permute.xlu0 %1255 }
 0x126   : > { %v1996_v4 = vsel %vm412_vm4, %v1256_v49, %v1258_v47 }
 0x129   : > { %v1260_v46 = vpop.permute.xlu1 %1259 }
 0x12a   : > { %1268 = vst.msk [vmem:[#allocation2 + $0x268] sm:$0xff] %vm236_vm0, %v1260_v46  ;;  %v1993_v48 = vsel %vm412_vm4, %v1258_v47, %v1260_v46 }
 0x12d   : > { %v2004_v10 = vpop.permute.xlu1 %1241 }
 0x131   : > { %v2006_v11 = vpop.permute.xlu1 %1224 }
 0x135   : > { %v2008_v12 = vpop.permute.xlu1 %1207 }
 0x139   : > { %v2010_v13 = vpop.permute.xlu1 %1190 }
 0x13d   : > { %v2012_v14 = vpop.permute.xlu1 %1173 }
 0x1de   : > { %v769_v53 = vpop.f32.mrf.mxu0 }
 0x1df   : > { %v770_v60 = vadd.f32 %v769_v53, %v697_v45 }
 0x1e0   : > { %v771_v55 = vpop.f32.mrf.mxu0 }
 0x1e1   : > { %v840_v56 = vpop.f32.mrf.mxu1  ;;  %v772_v57 = vadd.f32 %v771_v55, %v697_v45  ;;  %v844_v1 = vmax.f32 %v770_v60, 0.0 }
 0x1e2   : > { %v841_v59 = vadd.f32 %v840_v56, %v697_v45 }
 0x1e3   : > { %v842_v63 = vpop.f32.mrf.mxu1  ;;  %v845_v0 = vmax.f32 %v772_v57, 0.0  ;;  %v863_v9 = vmul.f32 %v851_v7, %v844_v1 }
 0x1e4   : > { %v846_v2 = vmax.f32 %v841_v59, 0.0 }
 0x1e5   : > { %v864_v6 = vmul.f32 %v855_v58, %v845_v0 }
 0x1e6   : > { %v865_v8 = vmul.f32 %v859_v62, %v846_v2 }
 0x1e7   : > { %877 = vrot.lane.b32.xlu1 %v864_v6, %s1647_s13 }
 0x1e8   : > { %879 = vrot.lane.b32.xlu0 %v865_v8, %s1647_s13 }
 0x1ec   : > { %875 = vrot.lane.b32.xlu0 %v863_v9, %s1647_s13  ;;  %s2378_s13 = smov 127  }
 0x259   : > { %v878_v15 = vpop.permute.xlu1 %877 }
 0x25a   : > { %v880_v16 = vpop.permute.xlu0 %879 }
 0x25b   : > { %v882_v17 = vsel %vm866_vm6, %v878_v15, %v880_v16 }
 0x25c   : > { %889 = vst.msk [vmem:[#allocation3 + $0x10] sm:$0xff] %vm337_vm11, %v882_v17 }
 0x25e   : > { %v876_v18 = vpop.permute.xlu0 %875 }
 0x25f   : > { %887 = vst.msk [vmem:[#allocation3] sm:$0xff] %vm886_vm14, %v876_v18  ;;  %v2017_v19 = vsel %vm866_vm6, %v876_v18, %v878_v15  ;;  %vm1355_vm6 = vcmask 654336  }
 0x260   : > { %1568 = vmatprep.mubr.msk.f32.mxu0 %vm1355_vm6, %v1270_v34  ;;  %1569 = vmatprep.mubr.msk.f32.mxu1 %vm1355_vm6, %v1270_v34  ;;  %vm2395_vm6 = vcmask 392192  }
 0x263   : > { %v2019_v20 = vld [vmem:[#allocation3 + $0x10] sm:$0xff] }
 0x264   : > { %896 = vst.msk [vmem:[#allocation2 + $0x10] sm:$0xff] %vm236_vm0, %v2019_v20 }
 0x266   : > { %v2023_v21 = vld [vmem:[#allocation3] sm:$0xff] }
 0x267   : > { %1082 = vrot.lane.b32.xlu0 %v2023_v21, %s1623_s25  ;;  %1096 = vrot.lane.b32.xlu1 %v2023_v21, %s1622_s24 }
 0x26b   : > { %1054 = vrot.lane.b32.xlu0 %v2023_v21, %s1625_s27  ;;  %1068 = vrot.lane.b32.xlu1 %v2023_v21, %s1624_s26 }
 0x26f   : > { %1026 = vrot.lane.b32.xlu0 %v2023_v21, %s1627_s29  ;;  %1040 = vrot.lane.b32.xlu1 %v2023_v21, %s1626_s28 }
 0x273   : > { %998 = vrot.lane.b32.xlu0 %v2023_v21, %s1629_s6  ;;  %1012 = vrot.lane.b32.xlu1 %v2023_v21, %s1628_s30 }
 0x277   : > { %970 = vrot.lane.b32.xlu0 %v2023_v21, %s1631_s8  ;;  %984 = vrot.lane.b32.xlu1 %v2023_v21, %s1630_s7 }
 0x27b   : > { %942 = vrot.lane.b32.xlu0 %v2023_v21, %s1633_s10  ;;  %956 = vrot.lane.b32.xlu1 %v2023_v21, %s1632_s9 }
 0x27f   : > { %914 = vrot.lane.b32.xlu0 %v2023_v21, %s1635_s12  ;;  %928 = vrot.lane.b32.xlu1 %v2023_v21, %s1634_s11 }
 0x283   : > { %1218 = vrot.lane.b32.xlu0 %v2023_v21, %s1638_s15  ;;  %900 = vrot.lane.b32.xlu1 %v2023_v21, %s2378_s13 }
 0x287   : > { %1201 = vrot.lane.b32.xlu0 %v2023_v21, %s1639_s16  ;;  %1235 = vrot.lane.b32.xlu1 %v2023_v21, %s1637_s14 }
 0x28b   : > { %1184 = vrot.lane.b32.xlu0 %v2023_v21, %s1640_s17  ;;  %1124 = vrot.lane.b32.xlu1 %v2023_v21, %s1644_s23 }
 0x28f   : > { %1167 = vrot.lane.b32.xlu0 %v2023_v21, %s1641_s20  ;;  %1098 = vrot.lane.b32.xlu1 %v2017_v19, %s1622_s24 }
 0x293   : > { %1152 = vrot.lane.b32.xlu0 %v2023_v21, %s2379_s22  ;;  %1086 = vrot.lane.b32.xlu1 %v2019_v20, %s1623_s25 }
 0x297   : > { %1138 = vrot.lane.b32.xlu0 %v2023_v21, %s2380_s21  ;;  %1070 = vrot.lane.b32.xlu1 %v2017_v19, %s1624_s26 }
 0x29b   : > { %1100 = vrot.lane.b32.xlu0 %v2019_v20, %s1622_s24  ;;  %1058 = vrot.lane.b32.xlu1 %v2019_v20, %s1625_s27  ;;  %s2381_s24 = smov 67  }
 0x29f   : > { %1084 = vrot.lane.b32.xlu0 %v2017_v19, %s1623_s25  ;;  %1042 = vrot.lane.b32.xlu1 %v2017_v19, %s1626_s28 }
 0x2a3   : > { %1072 = vrot.lane.b32.xlu0 %v2019_v20, %s1624_s26  ;;  %1030 = vrot.lane.b32.xlu1 %v2019_v20, %s1627_s29 }
 0x2a7   : > { %1056 = vrot.lane.b32.xlu0 %v2017_v19, %s1625_s27  ;;  %1014 = vrot.lane.b32.xlu1 %v2017_v19, %s1628_s30 }
 0x2ab   : > { %1044 = vrot.lane.b32.xlu0 %v2019_v20, %s1626_s28  ;;  %1002 = vrot.lane.b32.xlu1 %v2019_v20, %s1629_s6 }
 0x2af   : > { %1028 = vrot.lane.b32.xlu0 %v2017_v19, %s1627_s29  ;;  %986 = vrot.lane.b32.xlu1 %v2017_v19, %s1630_s7 }
 0x2b3   : > { %1016 = vrot.lane.b32.xlu0 %v2019_v20, %s1628_s30  ;;  %974 = vrot.lane.b32.xlu1 %v2019_v20, %s1631_s8 }
 0x2b7   : > { %1000 = vrot.lane.b32.xlu0 %v2017_v19, %s1629_s6  ;;  %958 = vrot.lane.b32.xlu1 %v2017_v19, %s1632_s9  ;;  %s1573_s6 = smul.u32 24, %s2407_s19 }
 0x2bb   : > { %988 = vrot.lane.b32.xlu0 %v2019_v20, %s1630_s7  ;;  %946 = vrot.lane.b32.xlu1 %v2019_v20, %s1633_s10 }
 0x2bf   : > { %972 = vrot.lane.b32.xlu0 %v2017_v19, %s1631_s8  ;;  %930 = vrot.lane.b32.xlu1 %v2017_v19, %s1634_s11 }
 0x2c3   : > { %960 = vrot.lane.b32.xlu0 %v2019_v20, %s1632_s9  ;;  %918 = vrot.lane.b32.xlu1 %v2019_v20, %s1635_s12  ;;  %s224_s9 = scalar_lea.vmem %s2359_s5, %s1573_s6 }
 0x2c7   : > { %944 = vrot.lane.b32.xlu0 %v2017_v19, %s1633_s10  ;;  %902 = vrot.lane.b32.xlu1 %v2017_v19, %s2378_s13 }
 0x2cb   : > { %932 = vrot.lane.b32.xlu0 %v2019_v20, %s1634_s11  ;;  %1237 = vrot.lane.b32.xlu1 %v2017_v19, %s1637_s14 }
 0x2cf   : > { %916 = vrot.lane.b32.xlu0 %v2017_v19, %s1635_s12  ;;  %1222 = vrot.lane.b32.xlu1 %v2019_v20, %s1638_s15 }
 0x2d3   : > { %904 = vrot.lane.b32.xlu0 %v2019_v20, %s2378_s13  ;;  %1205 = vrot.lane.b32.xlu1 %v2019_v20, %s1639_s16 }
 0x2d7   : > { %1239 = vrot.lane.b32.xlu0 %v2019_v20, %s1637_s14  ;;  %1188 = vrot.lane.b32.xlu1 %v2019_v20, %s1640_s17 }
 0x2d9   : > { %v1083_v22 = vpop.permute.xlu0 %1082  ;;  %v1097_v23 = vpop.permute.xlu1 %1096 }
 0x2db   : > { %1220 = vrot.lane.b32.xlu0 %v2017_v19, %s1638_s15  ;;  %1171 = vrot.lane.b32.xlu1 %v2019_v20, %s1641_s20 }
 0x2dd   : > { %v2145_v24 = vpop.permute.xlu0 %1054  ;;  %v1069_v25 = vpop.permute.xlu1 %1068 }
 0x2df   : > { %1203 = vrot.lane.b32.xlu0 %v2017_v19, %s1639_s16  ;;  %1156 = vrot.lane.b32.xlu1 %v2019_v20, %s2379_s22 }
 0x2e1   : > { %v2151_v26 = vpop.permute.xlu0 %1026  ;;  %v1041_v27 = vpop.permute.xlu1 %1040 }
 0x2e3   : > { %1186 = vrot.lane.b32.xlu0 %v2017_v19, %s1640_s17  ;;  %1142 = vrot.lane.b32.xlu1 %v2019_v20, %s2380_s21 }
 0x2e5   : > { %v2157_v28 = vpop.permute.xlu0 %998  ;;  %v2159_v29 = vpop.permute.xlu1 %1012 }
 0x2e7   : > { %1169 = vrot.lane.b32.xlu0 %v2017_v19, %s1641_s20  ;;  %1126 = vrot.lane.b32.xlu1 %v2017_v19, %s1644_s23 }
 0x2e9   : > { %v2165_v30 = vpop.permute.xlu0 %970  ;;  %v2167_v31 = vpop.permute.xlu1 %984 }
 0x2eb   : > { %1154 = vrot.lane.b32.xlu0 %v2017_v19, %s2379_s22  ;;  %1114 = vrot.lane.b32.xlu1 %v2019_v20, %s2381_s24 }
 0x2ed   : > { %v2173_v32 = vpop.permute.xlu0 %942  ;;  %v2175_v33 = vpop.permute.xlu1 %956 }
 0x2ef   : > { %1140 = vrot.lane.b32.xlu0 %v2017_v19, %s2380_s21  ;;  %1352 = vperm.xlu1 %1611, %v1349_v37  }
 0x2f1   : > { %v2182_v35 = vpop.permute.xlu0 %914  ;;  %v2184_v36 = vpop.permute.xlu1 %928 }
 0x2f3   : > { %1128 = vrot.lane.b32.xlu0 %v2019_v20, %s1644_s23 }
 0x2f5   : > { %v2191_v39 = vpop.permute.xlu0 %1218  ;;  %v2193_v40 = vpop.permute.xlu1 %900 }
 0x2f7   : > { %1112 = vrot.lane.b32.xlu0 %v2017_v19, %s2381_s24 }
 0x2f9   : > { %v2197_v41 = vpop.permute.xlu0 %1201  ;;  %v2199_v42 = vpop.permute.xlu1 %1235 }
 0x2fb   : > { %1110 = vrot.lane.b32.xlu0 %v2023_v21, %s2381_s24 }
 0x2fd   : > { %v2203_v43 = vpop.permute.xlu0 %1184  ;;  %v2205_v44 = vpop.permute.xlu1 %1124 }
 0x301   : > { %v2207_v45 = vpop.permute.xlu0 %1167  ;;  %v1099_v46 = vpop.permute.xlu1 %1098 }
 0x302   : > { %v1102_v47 = vsel %vm457_vm1, %v1097_v23, %v1099_v46 }
 0x305   : > { %v2210_v49 = vpop.permute.xlu0 %1152  ;;  %v1087_v5 = vpop.permute.xlu1 %1086 }
 0x306   : > { %1095 = vst.msk [vmem:[#allocation2 + $0x160] sm:$0xff] %vm236_vm0, %v1087_v5 }
 0x309   : > { %v2213_v50 = vpop.permute.xlu0 %1138  ;;  %v1071_v51 = vpop.permute.xlu1 %1070 }
 0x30a   : > { %v1074_v52 = vsel %vm427_vm3, %v1069_v25, %v1071_v51 }
 0x30d   : > { %v1101_v53 = vpop.permute.xlu0 %1100  ;;  %v1059_v54 = vpop.permute.xlu1 %1058  ;;  %v1315_v2 = vld [vmem:[#allocation2 + $0x160] sm:$0xff] }
 0x30e   : > { %v1103_v55 = vsel %vm457_vm1, %v1099_v46, %v1101_v53  ;;  %1109 = vst.msk [vmem:[#allocation2 + $0x178] sm:$0xff] %vm236_vm0, %v1101_v53  ;;  %1067 = vst.msk [vmem:[#allocation2 + $0x130] sm:$0xff] %vm236_vm0, %v1059_v54  ;;  %vm2382_vm1 = vcmask 1014784  }
 0x30f   : > { %1359 = vmatprep.subr.mxu0 %v1103_v55 }
 0x310   : > { %1360 = vmatpush1.msra.mxu0 %v1102_v47 }
 0x311   : > { %v1085_v56 = vpop.permute.xlu0 %1084  ;;  %v1043_v57 = vpop.permute.xlu1 %1042 }
 0x312   : > { %v1088_v58 = vsel %vm442_vm2, %v1083_v22, %v1085_v56  ;;  %v1089_v59 = vsel %vm442_vm2, %v1085_v56, %v1087_v5  ;;  %v1046_v60 = vsel %vm397_vm5, %v1041_v27, %v1043_v57  ;;  %vm2383_vm2 = vmmov %vm2382_vm1 }
 0x313   : > { %1361 = vmatprep.subr.mxu0 %v1089_v59 }
 0x314   : > { %1362 = vmatpush1.msra.mxu0 %v1088_v58 }
 0x315   : > { %v1073_v61 = vpop.permute.xlu0 %1072  ;;  %v1031_v62 = vpop.permute.xlu1 %1030  ;;  %v1318_v63 = vld [vmem:[#allocation2 + $0x178] sm:$0xff]  ;;  %v1309_v20 = vld [vmem:[#allocation2 + $0x130] sm:$0xff] }
 0x316   : > { %v1075_v0 = vsel %vm427_vm3, %v1071_v51, %v1073_v61  ;;  %1081 = vst.msk [vmem:[#allocation2 + $0x148] sm:$0xff] %vm236_vm0, %v1073_v61  ;;  %1039 = vst.msk [vmem:[#allocation2 + $0x100] sm:$0xff] %vm236_vm0, %v1031_v62  ;;  %1431 = vmatpush1.msra.mxu1 %v1318_v63  ;;  %vm2384_vm3 = vcmask 1039360  }
 0x317   : > { %1432 = vmatprep.subr.mxu1 %v1621_v3  ;;  %1363 = vmatprep.subr.mxu0 %v1075_v0 }
 0x318   : > { %1433 = vmatpush1.msra.mxu1 %v1315_v2  ;;  %1364 = vmatpush1.msra.mxu0 %v1074_v52 }
 0x319   : > { %v1057_v6 = vpop.permute.xlu0 %1056  ;;  %v1015_v1 = vpop.permute.xlu1 %1014  ;;  %1434 = vmatprep.subr.mxu1 %v1621_v3 }
 0x31a   : > { %v1060_v7 = vsel %vm412_vm4, %v2145_v24, %v1057_v6  ;;  %v1061_v8 = vsel %vm412_vm4, %v1057_v6, %v1059_v54  ;;  %v1018_v9 = vsel %vm367_vm9, %v2159_v29, %v1015_v1  ;;  %vm2385_vm4 = vcmask 359424  }
 0x31b   : > { %1365 = vmatprep.subr.mxu0 %v1061_v8 }
 0x31c   : > { %1366 = vmatpush1.msra.mxu0 %v1060_v7 }
 0x31d   : > { %v1045_v15 = vpop.permute.xlu0 %1044  ;;  %v1003_v16 = vpop.permute.xlu1 %1002  ;;  %v1312_v17 = vld [vmem:[#allocation2 + $0x148] sm:$0xff] }
 0x31e   : > { %v1047_v18 = vsel %vm397_vm5, %v1043_v57, %v1045_v15  ;;  %1053 = vst.msk [vmem:[#allocation2 + $0x118] sm:$0xff] %vm236_vm0, %v1045_v15  ;;  %1011 = vst.msk [vmem:[#allocation2 + $0xd0] sm:$0xff] %vm236_vm0, %v1003_v16  ;;  %1435 = vmatpush1.msra.mxu1 %v1312_v17  ;;  %vm2386_vm5 = vcmask 1031168  }
 0x31f   : > { %1436 = vmatprep.subr.mxu1 %v1621_v3  ;;  %1367 = vmatprep.subr.mxu0 %v1047_v18 }
 0x320   : > { %1437 = vmatpush1.msra.mxu1 %v1309_v20  ;;  %1368 = vmatpush1.msra.mxu0 %v1046_v60 }
 0x321   : > { %v1029_v22 = vpop.permute.xlu0 %1028  ;;  %v987_v23 = vpop.permute.xlu1 %986  ;;  %1438 = vmatprep.subr.mxu1 %v1621_v3 }
 0x322   : > { %v1032_v24 = vsel %vm382_vm7, %v2151_v26, %v1029_v22  ;;  %v1033_v25 = vsel %vm382_vm7, %v1029_v22, %v1031_v62  ;;  %v990_v27 = vsel %vm337_vm11, %v2167_v31, %v987_v23  ;;  %v1303_v26 = vld [vmem:[#allocation2 + $0x100] sm:$0xff]  ;;  %vm2387_vm7 = vmmov %vm2386_vm5 }
 0x323   : > { %1369 = vmatprep.subr.mxu0 %v1033_v25 }
 0x324   : > { %1370 = vmatpush1.msra.mxu0 %v1032_v24 }
 0x325   : > { %v1017_v29 = vpop.permute.xlu0 %1016  ;;  %v975_v34 = vpop.permute.xlu1 %974  ;;  %v1306_v37 = vld [vmem:[#allocation2 + $0x118] sm:$0xff] }
 0x326   : > { %v1019_v38 = vsel %vm367_vm9, %v1015_v1, %v1017_v29  ;;  %1025 = vst.msk [vmem:[#allocation2 + $0xe8] sm:$0xff] %vm236_vm0, %v1017_v29  ;;  %983 = vst.msk [vmem:[#allocation2 + $0xa0] sm:$0xff] %vm236_vm0, %v975_v34  ;;  %1439 = vmatpush1.msra.mxu1 %v1306_v37  ;;  %vm2388_vm9 = vcmask 367616  }
 0x327   : > { %1440 = vmatprep.subr.mxu1 %v1621_v3  ;;  %1371 = vmatprep.subr.mxu0 %v1019_v38  ;;  %vm2394_vm14 = vmmov %vm2388_vm9 }
 0x328   : > { %1441 = vmatpush1.msra.mxu1 %v1303_v26  ;;  %1372 = vmatpush1.msra.mxu0 %v1018_v9 }
 0x329   : > { %v1001_v46 = vpop.permute.xlu0 %1000  ;;  %v959_v31 = vpop.permute.xlu1 %958  ;;  %1442 = vmatprep.subr.mxu1 %v1621_v3 }
 0x32a   : > { %v1004_v47 = vsel %vm352_vm10, %v2157_v28, %v1001_v46  ;;  %v1005_v5 = vsel %vm352_vm10, %v1001_v46, %v1003_v16  ;;  %v962_v51 = vsel %vm307_vm13, %v2175_v33, %v959_v31  ;;  %v1297_v28 = vld [vmem:[#allocation2 + $0xd0] sm:$0xff]  ;;  %vm2389_vm10 = vmmov %vm2384_vm3 }
 0x32b   : > { %1373 = vmatprep.subr.mxu0 %v1005_v5 }
 0x32c   : > { %1374 = vmatpush1.msra.mxu0 %v1004_v47 }
 0x32d   : > { %v989_v52 = vpop.permute.xlu0 %988  ;;  %v947_v53 = vpop.permute.xlu1 %946  ;;  %v1300_v54 = vld [vmem:[#allocation2 + $0xe8] sm:$0xff] }
 0x32e   : > { %v991_v55 = vsel %vm337_vm11, %v987_v23, %v989_v52  ;;  %997 = vst.msk [vmem:[#allocation2 + $0xb8] sm:$0xff] %vm236_vm0, %v989_v52  ;;  %955 = vst.msk [vmem:[#allocation2 + $0x70] sm:$0xff] %vm236_vm0, %v947_v53  ;;  %1443 = vmatpush1.msra.mxu1 %v1300_v54 }
 0x32f   : > { %1444 = vmatprep.subr.mxu1 %v1621_v3  ;;  %1375 = vmatprep.subr.mxu0 %v991_v55  ;;  %vm2390_vm11 = vmmov %vm2385_vm4 }
 0x330   : > { %1445 = vmatpush1.msra.mxu1 %v1297_v28  ;;  %1376 = vmatpush1.msra.mxu0 %v990_v27 }
 0x331   : > { %v973_v56 = vpop.permute.xlu0 %972  ;;  %v931_v33 = vpop.permute.xlu1 %930  ;;  %1446 = vmatprep.subr.mxu1 %v1621_v3 }
 0x332   : > { %v976_v57 = vsel %vm322_vm12, %v2165_v30, %v973_v56  ;;  %v977_v58 = vsel %vm322_vm12, %v973_v56, %v975_v34  ;;  %v934_v59 = vsel %vm277_vm15, %v2184_v36, %v931_v33  ;;  %v1291_v30 = vld [vmem:[#allocation2 + $0xa0] sm:$0xff]  ;;  %vm2391_vm12 = vmmov %vm2385_vm4 }
 0x333   : > { %1377 = vmatprep.subr.mxu0 %v977_v58 }
 0x334   : > { %1378 = vmatpush1.msra.mxu0 %v976_v57 }
 0x335   : > { %v961_v60 = vpop.permute.xlu0 %960  ;;  %v919_v61 = vpop.permute.xlu1 %918  ;;  %v1294_v62 = vld [vmem:[#allocation2 + $0xb8] sm:$0xff] }
 0x336   : > { %v963_v63 = vsel %vm307_vm13, %v959_v31, %v961_v60  ;;  %969 = vst.msk [vmem:[#allocation2 + $0x88] sm:$0xff] %vm236_vm0, %v961_v60  ;;  %927 = vst.msk [vmem:[#allocation2 + $0x40] sm:$0xff] %vm236_vm0, %v919_v61  ;;  %1447 = vmatpush1.msra.mxu1 %v1294_v62  ;;  %vm2392_vm13 = vcmask 384000  }
 0x337   : > { %1448 = vmatprep.subr.mxu1 %v1621_v3  ;;  %1379 = vmatprep.subr.mxu0 %v963_v63 }
 0x338   : > { %1449 = vmatpush1.msra.mxu1 %v1291_v30  ;;  %1380 = vmatpush1.msra.mxu0 %v962_v51 }
 0x339   : > { %v945_v0 = vpop.permute.xlu0 %944  ;;  %v903_v36 = vpop.permute.xlu1 %902  ;;  %1450 = vmatprep.subr.mxu1 %v1621_v3 }
 0x33a   : > { %v948_v2 = vsel %vm2382_vm1, %v2173_v32, %v945_v0  ;;  %v949_v6 = vsel %vm2383_vm2, %v945_v0, %v947_v53  ;;  %v906_v1 = vsel %vm2384_vm3, %v2193_v40, %v903_v36  ;;  %v1285_v32 = vld [vmem:[#allocation2 + $0x70] sm:$0xff]  ;;  %vm2396_vm1 = vmmov %vm2392_vm13 }
 0x33b   : > { %1381 = vmatprep.subr.mxu0 %v949_v6  ;;  %vm2397_vm2 = vmmov %vm2396_vm1 }
 0x33c   : > { %1382 = vmatpush1.msra.mxu0 %v948_v2  ;;  %vm2399_vm3 = vmmov %vm2395_vm6 }
 0x33d   : > { %v933_v7 = vpop.permute.xlu0 %932  ;;  %v1238_v8 = vpop.permute.xlu1 %1237  ;;  %v1288_v9 = vld [vmem:[#allocation2 + $0x88] sm:$0xff] }
 0x33e   : > { %v935_v15 = vsel %vm277_vm15, %v931_v33, %v933_v7  ;;  %941 = vst.msk [vmem:[#allocation2 + $0x58] sm:$0xff] %vm236_vm0, %v933_v7  ;;  %v1243_v16 = vsel %vm2385_vm4, %v2199_v42, %v1238_v8  ;;  %1451 = vmatpush1.msra.mxu1 %v1288_v9  ;;  %vm2393_vm15 = vmmov %vm2388_vm9  ;;  %vm2400_vm4 = vcmask 539648  }
 0x33f   : > { %1452 = vmatprep.subr.mxu1 %v1621_v3  ;;  %1383 = vmatprep.subr.mxu0 %v935_v15 }
 0x340   : > { %1453 = vmatpush1.msra.mxu1 %v1285_v32  ;;  %1384 = vmatpush1.msra.mxu0 %v934_v59 }
 0x341   : > { %v917_v40 = vpop.permute.xlu0 %916  ;;  %v1223_v17 = vpop.permute.xlu1 %1222  ;;  %1454 = vmatprep.subr.mxu1 %v1621_v3 }
 0x342   : > { %v920_v18 = vsel %vm2386_vm5, %v2182_v35, %v917_v40  ;;  %v921_v20 = vsel %vm2387_vm7, %v917_v40, %v919_v61  ;;  %v1228_v22 = vsel %vm2388_vm9, %v1223_v17, %v2006_v11  ;;  %v1279_v11 = vld [vmem:[#allocation2 + $0x40] sm:$0xff]  ;;  %vm2401_vm5 = vcmask 531456   ;;  %vm2403_vm9 = vmmov %vm2400_vm4 }
 0x343   : > { %1234 = vst.msk [vmem:[#allocation2 + $0x238] sm:$0xff] %vm236_vm0, %v1228_v22  ;;  %1385 = vmatprep.subr.mxu0 %v921_v20  ;;  %vm2402_vm7 = vmmov %vm2401_vm5 }
 0x344   : > { %1386 = vmatpush1.msra.mxu0 %v920_v18 }
 0x345   : > { %v905_v42 = vpop.permute.xlu0 %904  ;;  %v1206_v23 = vpop.permute.xlu1 %1205  ;;  %v1282_v24 = vld [vmem:[#allocation2 + $0x58] sm:$0xff] }
 0x346   : > { %v907_v25 = vsel %vm2389_vm10, %v903_v36, %v905_v42  ;;  %913 = vst.msk [vmem:[#allocation2 + $0x28] sm:$0xff] %vm236_vm0, %v905_v42  ;;  %v1211_v27 = vsel %vm570_vm8, %v1206_v23, %v2008_v12  ;;  %1455 = vmatpush1.msra.mxu1 %v1282_v24  ;;  %vm2404_vm10 = vcmask 547840  }
 0x347   : > { %1217 = vst.msk [vmem:[#allocation2 + $0x220] sm:$0xff] %vm236_vm0, %v1211_v27  ;;  %1456 = vmatprep.subr.mxu1 %v1621_v3  ;;  %1387 = vmatprep.subr.mxu0 %v907_v25 }
 0x348   : > { %1457 = vmatpush1.msra.mxu1 %v1279_v11  ;;  %1388 = vmatpush1.msra.mxu0 %v906_v1 }
 0x349   : > { %v1240_v35 = vpop.permute.xlu0 %1239  ;;  %v1189_v29 = vpop.permute.xlu1 %1188  ;;  %1458 = vmatprep.subr.mxu1 %v1621_v3  ;;  %1389 = vmatprep.subr.mxu0 %v2017_v19 }
 0x34a   : > { %v1244_v34 = vsel %vm2390_vm11, %v1238_v8, %v1240_v35  ;;  %v1245_v12 = vsel %vm2391_vm12, %v1240_v35, %v2004_v10  ;;  %v1194_v37 = vsel %vm2392_vm13, %v1189_v29, %v2010_v13  ;;  %1390 = vmatpush1.msra.mxu0 %v2023_v21  ;;  %v1342_v52 = vld [vmem:[#allocation2 + $0x238] sm:$0xff]  ;;  %vm2405_vm11 = vmmov %vm2404_vm10 }
 0x34b   : > { %1251 = vst.msk [vmem:[#allocation2 + $0x250] sm:$0xff] %vm236_vm0, %v1245_v12  ;;  %1200 = vst.msk [vmem:[#allocation2 + $0x208] sm:$0xff] %vm236_vm0, %v1194_v37  ;;  %1403 = vmatprep.subr.mxu0 %v1993_v48  ;;  %v1273_v48 = vld [vmem:[#allocation2 + $0x10] sm:$0xff] }
 0x34c   : > { %1404 = vmatpush2.msra.mxu0 %v1996_v4 }
 0x34d   : > { %v1221_v38 = vpop.permute.xlu0 %1220  ;;  %v1172_v19 = vpop.permute.xlu1 %1171  ;;  %v1276_v26 = vld [vmem:[#allocation2 + $0x28] sm:$0xff]  ;;  %1405 = vmatprep.subr.mxu0 %v1244_v34 }
 0x34e   : > { %v1226_v10 = vsel %vm2393_vm15, %v2191_v39, %v1221_v38  ;;  %v1227_v46 = vsel %vm2394_vm14, %v1221_v38, %v1223_v17  ;;  %v1177_v13 = vsel %vm2395_vm6, %v1172_v19, %v2012_v14  ;;  %1459 = vmatpush1.msra.mxu1 %v1276_v26  ;;  %1406 = vmatpush2.msra.mxu0 %v1243_v16  ;;  %v1348_v39 = vld [vmem:[#allocation2 + $0x268] sm:$0xff]  ;;  %v1339_v54 = vld [vmem:[#allocation2 + $0x220] sm:$0xff] }
 0x34f   : > { %1183 = vst.msk [vmem:[#allocation2 + $0x1f0] sm:$0xff] %vm236_vm0, %v1177_v13  ;;  %1460 = vmatprep.subr.mxu1 %v1621_v3  ;;  %1407 = vmatprep.subr.mxu0 %v1227_v46 }
 0x350   : > { %1461 = vmatpush1.msra.mxu1 %v1273_v48  ;;  %1408 = vmatpush2.msra.mxu0 %v1226_v10 }
 0x351   : > { %v1204_v4 = vpop.permute.xlu0 %1203  ;;  %1474 = vmatprep.subr.mxu1 %v1621_v3  ;;  %v1157_v21 = vpop.permute.xlu1 %1156 }
 0x352   : > { %v1209_v31 = vsel %vm570_vm8, %v2197_v41, %v1204_v4  ;;  %v1210_v14 = vsel %vm570_vm8, %v1204_v4, %v1206_v23  ;;  %1165 = vst.msk [vmem:[#allocation2 + $0x1d8] sm:$0xff] %vm236_vm0, %v1157_v21  ;;  %1475 = vmatpush2.msra.mxu1 %v1348_v39  ;;  %v1345_v47 = vld [vmem:[#allocation2 + $0x250] sm:$0xff]  ;;  %v1336_v56 = vld [vmem:[#allocation2 + $0x208] sm:$0xff]  ;;  %vm2398_vm8 = vmmov %vm2395_vm6 }
 0x353   : > { %1476 = vmatprep.subr.mxu1 %v1621_v3  ;;  %1409 = vmatprep.subr.mxu0 %v1210_v14 }
 0x354   : > { %1477 = vmatpush2.msra.mxu1 %v1345_v47  ;;  %1410 = vmatpush2.msra.mxu0 %v1209_v31 }
 0x355   : > { %v1187_v5 = vpop.permute.xlu0 %1186  ;;  %1478 = vmatprep.subr.mxu1 %v1621_v3  ;;  %v1143_v51 = vpop.permute.xlu1 %1142 }
 0x356   : > { %v1192_v53 = vsel %vm2396_vm1, %v2203_v43, %v1187_v5  ;;  %v1193_v41 = vsel %vm2397_vm2, %v1187_v5, %v1189_v29  ;;  %1151 = vst.msk [vmem:[#allocation2 + $0x1c0] sm:$0xff] %vm236_vm0, %v1143_v51  ;;  %1479 = vmatpush2.msra.mxu1 %v1342_v52  ;;  %v1333_v58 = vld [vmem:[#allocation2 + $0x1f0] sm:$0xff] }
 0x357   : > { %1480 = vmatprep.subr.mxu1 %v1621_v3  ;;  %1411 = vmatprep.subr.mxu0 %v1193_v41 }
 0x358   : > { %1481 = vmatpush2.msra.mxu1 %v1339_v54  ;;  %1412 = vmatpush2.msra.mxu0 %v1192_v53 }
 0x359   : > { %v1170_v55 = vpop.permute.xlu0 %1169  ;;  %1482 = vmatprep.subr.mxu1 %v1621_v3  ;;  %v1127_v28 = vpop.permute.xlu1 %1126  ;;  %v1330_v61 = vld [vmem:[#allocation2 + $0x1d8] sm:$0xff] }
 0x35a   : > { %v1175_v33 = vsel %vm2398_vm8, %v2207_v45, %v1170_v55  ;;  %v1176_v43 = vsel %vm2399_vm3, %v1170_v55, %v1172_v19  ;;  %v1130_v57 = vsel %vm2400_vm4, %v2205_v44, %v1127_v28  ;;  %1483 = vmatpush2.msra.mxu1 %v1336_v56 }
 0x35b   : > { %1484 = vmatprep.subr.mxu1 %v1621_v3  ;;  %1413 = vmatprep.subr.mxu0 %v1176_v43 }
 0x35c   : > { %1485 = vmatpush2.msra.mxu1 %v1333_v58  ;;  %1414 = vmatpush2.msra.mxu0 %v1175_v33 }
 0x35d   : > { %v1155_v59 = vpop.permute.xlu0 %1154  ;;  %1486 = vmatprep.subr.mxu1 %v1621_v3  ;;  %v1115_v60 = vpop.permute.xlu1 %1114  ;;  %v1327_v44 = vld [vmem:[#allocation2 + $0x1c0] sm:$0xff] }
 0x35e   : > { %v1158_v45 = vsel %vm236_vm0, %v2210_v49, %v1155_v59  ;;  %v1159_v62 = vsel %vm236_vm0, %v1155_v59, %v1157_v21  ;;  %1123 = vst.msk [vmem:[#allocation2 + $0x190] sm:$0xff] %vm236_vm0, %v1115_v60  ;;  %1487 = vmatpush2.msra.mxu1 %v1330_v61 }
 0x35f   : > { %1488 = vmatprep.subr.mxu1 %v1621_v3  ;;  %1415 = vmatprep.subr.mxu0 %v1159_v62 }
 0x360   : > { %1489 = vmatpush2.msra.mxu1 %v1327_v44  ;;  %1416 = vmatpush2.msra.mxu0 %v1158_v45 }
 0x361   : > { %v1141_v63 = vpop.permute.xlu0 %1140  ;;  %1490 = vmatprep.subr.mxu1 %v1621_v3 }
 0x362   : > { %v1144_v30 = vsel %vm2401_vm5, %v2213_v50, %v1141_v63  ;;  %v1145_v0 = vsel %vm2402_vm7, %v1141_v63, %v1143_v51  ;;  %v1269_v50 = vld [vmem:[%s2356_s2] sm:$0xff] }
 0x363   : > { %1417 = vmatprep.subr.mxu0 %v1145_v0 }
 0x364   : > { %1418 = vmatpush2.msra.mxu0 %v1144_v30 }
 0x365   : > { %v1129_v49 = vpop.permute.xlu0 %1128  ;;  %v1321_v9 = vld [vmem:[#allocation2 + $0x190] sm:$0xff] }
 0x366   : > { %v1131_v36 = vsel %vm2403_vm9, %v1127_v28, %v1129_v49  ;;  %1137 = vst.msk [vmem:[#allocation2 + $0x1a8] sm:$0xff] %vm236_vm0, %v1129_v49 }
 0x367   : > { %1419 = vmatprep.subr.mxu0 %v1131_v36 }
 0x368   : > { %1420 = vmatpush2.msra.mxu0 %v1130_v57 }
 0x369   : > { %v1113_v2 = vpop.permute.xlu0 %1112 }
 0x36a   : > { %v1117_v6 = vsel %vm2404_vm10, %v1113_v2, %v1115_v60  ;;  %v1353_v15 = vpop.permute.xlu1 %1352 }
 0x36b   : > { %1421 = vmatprep.subr.mxu0 %v1117_v6 }
 0x36d   : > { %v1111_v1 = vpop.permute.xlu0 %1110  ;;  %v1324_v7 = vld [vmem:[#allocation2 + $0x1a8] sm:$0xff] }
 0x36e   : > { %v1116_v8 = vsel %vm2405_vm11, %v1111_v1, %v1113_v2  ;;  %1491 = vmatpush2.msra.mxu1 %v1324_v7 }
 0x36f   : > { %1492 = vmatprep.subr.mxu1 %v1621_v3  ;;  %1422 = vmatpush2.msra.mxu0 %v1116_v8 }
 0x370   : > { %1493 = vmatpush2.msra.mxu1 %v1321_v9  ;;  %1424 = vmatmul.mubr.f32.vlgmr.msra.gmra.mxu0 %v1269_v50 }
 0x371   : > { %1495 = vmatmul.mubr.f32.vlgmr.msra.gmra.mxu1 %v1269_v50 }
 0x430   : > { %v1425_v16 = vpop.f32.mrf.mxu0 }
 0x431   : > { %v1496_v32 = vpop.f32.mrf.mxu1  ;;  %v1426_v40 = vadd.f32 %v1425_v16, %v1353_v15 }
 0x432   : > { %v1497_v17 = vadd.f32 %v1496_v32, %v1353_v15  ;;  %v1427_v18 = vpop.f32.mrf.mxu0 }
 0x433   : > { %1500 = vst [vmem:[%s224_s9] sm:$0xff] %v1426_v40  ;;  %v1428_v20 = vadd.f32 %v1427_v18, %v1353_v15  ;;  %v1498_v22 = vpop.f32.mrf.mxu1 }
 0x434   : > { %1502 = vst.msk [vmem:[%s224_s9 + $0x10] sm:$0xff] %vm236_vm0, %v1497_v17 }
 0x435   : > { %1501 = vst [vmem:[%s224_s9 + $0x8] sm:$0xff] %v1428_v20 }
 0x436 PF: > { %s15_s18 = sadd.s32 1, %s1619_s18  }
 0x437   : > { %p12_p4 = scmp.ge.s32.totalorder %s15_s18, 4  }
 0x439   :  { %14 = sbr.rel (!%p12_p4) target bundleno = 1 (0x1), region = 70 }

</bundles_post_ra>
